<compile_context>
chip_gen: v5e
topology: v5e:2x2
jax: 0.10.0
libtpu: 0.0.40
codegen_flags: <defaults>
</compile_context>

<pallas_src>
import functools

import jax
import jax.numpy as jnp
from jax import lax
from jax.experimental import pallas as pl
from jax.experimental.pallas import tpu as pltpu


def _round_up(x, m):
    return (x + m - 1) // m * m


@functools.lru_cache(maxsize=None)
def _vmem_limit_bytes():
    # Per-generation VMEM cap: ~half of physical VMEM, clamped to [32, 96] MiB.
    # (v7x: 64 MiB physical -> 32 MiB; v5e/v6e: 128 MiB -> 64 MiB.)
    try:
        cap = int(pltpu.get_tpu_info().vmem_capacity_bytes)
        return int(min(max(cap // 2, 32 * 1024 * 1024), 96 * 1024 * 1024))
    except Exception:
        return 32 * 1024 * 1024


_MAX_COL_TILE = 1024      # lane-aligned column tile for the conv stages
_MAX_BATCH_TILE = 256     # batch tile for the classifier stage


# ---------------------------------------------------------------------------
# Pallas kernels
# ---------------------------------------------------------------------------
def conv_pool_relu_kernel(p_ref, w_ref, b_ref, o_ref):
    # ReLU(MaxPool2x2(conv + bias)) == ReLU(max_k(conv_k) + bias) since the
    # bias is constant per pool window.
    #   p_ref: (4, F_pad, T)  im2col patches, one plane per 2x2 pool offset,
    #                         columns = flattened (image, pooled position)
    #   w_ref: (C_out, F_pad) conv weight flattened in PyTorch (c,kh,kw) order
    #   b_ref: (C_out, 1)
    #   o_ref: (C_out, T)     channel-major, lane-dense column tile
    w = w_ref[...]
    y0 = jnp.dot(w, p_ref[0], preferred_element_type=jnp.float32)
    y1 = jnp.dot(w, p_ref[1], preferred_element_type=jnp.float32)
    y2 = jnp.dot(w, p_ref[2], preferred_element_type=jnp.float32)
    y3 = jnp.dot(w, p_ref[3], preferred_element_type=jnp.float32)
    m = jnp.maximum(jnp.maximum(y0, y1), jnp.maximum(y2, y3))
    o_ref[...] = jnp.maximum(m + b_ref[...], 0.0)


def classifier_kernel(f_ref, w1_ref, b1_ref, w2_ref, b2_ref, w3_ref, b3_ref,
                      o_ref):
    # Linear(704,120)+ReLU -> Linear(120,84)+ReLU -> Linear(84,20) -> Softmax.
    # All weights/biases are zero-padded to 128-wide lanes; the fc3 bias is
    # -inf padded so the 128-lane softmax normalizes over the 20 real logits.
    h = jnp.dot(f_ref[...], w1_ref[...], preferred_element_type=jnp.float32)
    h = jnp.maximum(h + b1_ref[...], 0.0)
    h = jnp.dot(h, w2_ref[...], preferred_element_type=jnp.float32)
    h = jnp.maximum(h + b2_ref[...], 0.0)
    z = jnp.dot(h, w3_ref[...], preferred_element_type=jnp.float32) + b3_ref[...]
    z = z - jnp.max(z, axis=-1, keepdims=True)
    e = jnp.exp(z)                              # padded lanes: exp(-inf) == 0
    p = e / jnp.sum(e, axis=-1, keepdims=True)
    o_ref[...] = p[:, :o_ref.shape[1]]


# ---------------------------------------------------------------------------
# pallas_call wrappers
# ---------------------------------------------------------------------------
def _col_tiling(cols):
    """Return (padded total columns, column tile); tile is a 128 multiple."""
    if cols <= _MAX_COL_TILE:
        t = _round_up(cols, 128)
        return t, t
    return _round_up(cols, _MAX_COL_TILE), _MAX_COL_TILE


def conv_pool_relu(p, w, b, tile):
    n_off, f_pad, cp = p.shape
    c_out = w.shape[0]
    flops = 2 * c_out * f_pad * cp * n_off
    bytes_accessed = 4 * (n_off * f_pad * cp + c_out * f_pad + c_out + c_out * cp)
    return pl.pallas_call(
        conv_pool_relu_kernel,
        out_shape=jax.ShapeDtypeStruct((c_out, cp), jnp.float32),
        grid=(cp // tile,),
        in_specs=[
            pl.BlockSpec((n_off, f_pad, tile), lambda j: (0, 0, j)),
            pl.BlockSpec((c_out, f_pad), lambda j: (0, 0)),
            pl.BlockSpec((c_out, 1), lambda j: (0, 0)),
        ],
        out_specs=pl.BlockSpec((c_out, tile), lambda j: (0, j)),
        compiler_params=pltpu.CompilerParams(
            dimension_semantics=("parallel",),
            vmem_limit_bytes=_vmem_limit_bytes()),
        cost_estimate=pl.CostEstimate(flops=flops, transcendentals=0,
                                      bytes_accessed=bytes_accessed),
    )(p, w, b)


def classifier(feat, w1, b1, w2, b2, w3, b3, tile_n, n_cls):
    n_pad, f_dim = feat.shape
    flops = 2 * n_pad * (f_dim * 128 + 128 * 128 + 128 * 128)
    bytes_accessed = 4 * (n_pad * f_dim + f_dim * 128 + 2 * 128 * 128
                          + 3 * 128 + n_pad * n_cls)
    return pl.pallas_call(
        classifier_kernel,
        out_shape=jax.ShapeDtypeStruct((n_pad, n_cls), jnp.float32),
        grid=(n_pad // tile_n,),
        in_specs=[
            pl.BlockSpec((tile_n, f_dim), lambda i: (i, 0)),
            pl.BlockSpec((f_dim, 128), lambda i: (0, 0)),
            pl.BlockSpec((1, 128), lambda i: (0, 0)),
            pl.BlockSpec((128, 128), lambda i: (0, 0)),
            pl.BlockSpec((1, 128), lambda i: (0, 0)),
            pl.BlockSpec((128, 128), lambda i: (0, 0)),
            pl.BlockSpec((1, 128), lambda i: (0, 0)),
        ],
        out_specs=pl.BlockSpec((tile_n, n_cls), lambda i: (i, 0)),
        compiler_params=pltpu.CompilerParams(
            dimension_semantics=("parallel",),
            vmem_limit_bytes=_vmem_limit_bytes()),
        cost_estimate=pl.CostEstimate(flops=flops, transcendentals=n_pad * 128,
                                      bytes_accessed=bytes_accessed),
    )(feat, w1, b1, w2, b2, w3, b3)


# ---------------------------------------------------------------------------
# XLA glue (pure data movement, no model FLOPs)
# ---------------------------------------------------------------------------
def _im2col_pool_offsets(x_nchw, ksize, out_h, out_w, f_pad, cp_pad):
    """Patches feeding ReLU(MaxPool2x2(Conv kxk VALID)).

    Returns (4, f_pad, cp_pad) f32; plane k = 2x2 pool offset (a, b); rows =
    conv feature in PyTorch (c, kh, kw) flatten order (zero padded); columns =
    flattened (image, pooled row, pooled col), zero padded to cp_pad.
    """
    n = x_nchw.shape[0]
    pat = lax.conv_general_dilated_patches(
        x_nchw, (ksize, ksize), (1, 1), 'VALID',
        dimension_numbers=('NCHW', 'OIHW', 'NCHW'),
        precision=lax.Precision.HIGHEST)            # (N, C*k*k, H', W'), exact
    f = pat.shape[1]
    cols = n * out_h * out_w
    planes = []
    for a in range(2):
        for b in range(2):
            blk = pat[:, :, a:a + 2 * out_h:2, b:b + 2 * out_w:2]   # (N,F,oh,ow)
            blk = blk.transpose(1, 0, 2, 3).reshape(f, cols)
            planes.append(jnp.pad(blk, ((0, f_pad - f), (0, cp_pad - cols))))
    return jnp.stack(planes, axis=0)


def net_sl_forward(x, params):
    w1c, b1c, w2c, b2c, wf1, bf1, wf2, bf2, wf3, bf3 = params
    n = x.shape[0]
    p1_pos, p2_pos = 12 * 26, 4 * 11           # pooled positions per image
    f1, f2 = 1 * 25, 6 * 25                    # conv contraction sizes
    f1p, f2p = _round_up(f1, 8), _round_up(f2, 8)
    n_cls = wf3.shape[0]                       # 20
    feat_dim = wf1.shape[1]                    # 704 = 16*4*11
    feat_pad = _round_up(feat_dim, 128)        # 768

    cp1, tile1 = _col_tiling(n * p1_pos)
    cp2, tile2 = _col_tiling(n * p2_pos)

    # -- encoder stage 1: Conv2d(1,6,5) -> MaxPool(2,2) -> ReLU : 28x56 -> 12x26
    p1 = _im2col_pool_offsets(x, 5, 12, 26, f1p, cp1)
    w1 = jnp.pad(w1c.reshape(6, f1), ((0, 0), (0, f1p - f1)))
    y1 = conv_pool_relu(p1, w1, b1c.reshape(6, 1), tile1)          # (6, cp1)
    y1 = y1[:, :n * p1_pos].reshape(6, n, 12, 26).transpose(1, 0, 2, 3)

    # -- encoder stage 2: Conv2d(6,16,5) -> MaxPool(2,2) -> ReLU : 12x26 -> 4x11
    p2 = _im2col_pool_offsets(y1, 5, 4, 11, f2p, cp2)
    w2 = jnp.pad(w2c.reshape(16, f2), ((0, 0), (0, f2p - f2)))
    y2 = conv_pool_relu(p2, w2, b2c.reshape(16, 1), tile2)         # (16, cp2)

    # -- flatten to PyTorch (C,H,W) order: feat[i, c*44 + p] = y2[c, i*44 + p]
    # TODO(synk): the (C, N*pos) -> (N, C*pos) relayout (and the im2col patch
    # extraction) stay as XLA glue; the lane<->sublane reshuffle has no robust
    # in-kernel Mosaic lowering, so conv2 and the classifier are two
    # pallas_calls instead of one fused kernel.
    feat = y2[:, :n * p2_pos].reshape(16, n, p2_pos)
    feat = feat.transpose(1, 0, 2).reshape(n, 16 * p2_pos)         # (n, 704)

    # -- classifier: lane widths padded to 128, fc3 bias -inf padded so the
    #    in-kernel 128-lane softmax normalizes over the first 20 logits only.
    tile_n = _MAX_BATCH_TILE if n > _MAX_BATCH_TILE else _round_up(n, 8)
    n_pad = _round_up(n, tile_n)
    feat = jnp.pad(feat, ((0, n_pad - n), (0, feat_pad - feat_dim)))

    w1t = jnp.pad(wf1.T, ((0, feat_pad - feat_dim), (0, 128 - wf1.shape[0])))
    b1p = jnp.pad(bf1, (0, 128 - bf1.shape[0])).reshape(1, 128)
    w2t = jnp.pad(wf2.T, ((0, 128 - wf2.shape[1]), (0, 128 - wf2.shape[0])))
    b2p = jnp.pad(bf2, (0, 128 - bf2.shape[0])).reshape(1, 128)
    w3t = jnp.pad(wf3.T, ((0, 128 - wf3.shape[1]), (0, 128 - n_cls)))
    b3p = jnp.concatenate(
        [bf3, jnp.full((128 - n_cls,), -jnp.inf, jnp.float32)]).reshape(1, 128)

    out = classifier(feat, w1t, b1p, w2t, b2p, w3t, b3p, tile_n, n_cls)
    return out[:n]


# ---------------------------------------------------------------------------
# Pure-JAX reference (for correctness check)
# ---------------------------------------------------------------------------
def net_sl_reference(x, params):
    w1c, b1c, w2c, b2c, wf1, bf1, wf2, bf2, wf3, bf3 = params
    dn = ('NCHW', 'OIHW', 'NCHW')
    y = lax.conv_general_dilated(x, w1c, (1, 1), 'VALID', dimension_numbers=dn)
    y = y + b1c.reshape(1, -1, 1, 1)
    y = lax.reduce_window(y, -jnp.inf, lax.max, (1, 1, 2, 2), (1, 1, 2, 2), 'VALID')
    y = jnp.maximum(y, 0.0)
    y = lax.conv_general_dilated(y, w2c, (1, 1), 'VALID', dimension_numbers=dn)
    y = y + b2c.reshape(1, -1, 1, 1)
    y = lax.reduce_window(y, -jnp.inf, lax.max, (1, 1, 2, 2), (1, 1, 2, 2), 'VALID')
    y = jnp.maximum(y, 0.0)
    f = y.reshape(y.shape[0], -1)
    h = jnp.maximum(f @ wf1.T + bf1, 0.0)
    h = jnp.maximum(h @ wf2.T + bf2, 0.0)
    z = h @ wf3.T + bf3
    return jax.nn.softmax(z, axis=1)


if __name__ == "__main__":
    key = jax.random.PRNGKey(0)
    ks = jax.random.split(key, 11)
    n = 2
    x = jax.random.normal(ks[0], (n, 1, 28, 56), jnp.float32)

    # Deterministic synthetic parameters (shapes from Net_SL.__init__)
    params = (
        0.10 * jax.random.normal(ks[1], (6, 1, 5, 5), jnp.float32),    # conv1 w
        0.10 * jax.random.normal(ks[2], (6,), jnp.float32),            # conv1 b
        0.10 * jax.random.normal(ks[3], (16, 6, 5, 5), jnp.float32),   # conv2 w
        0.10 * jax.random.normal(ks[4], (16,), jnp.float32),           # conv2 b
        0.05 * jax.random.normal(ks[5], (120, 704), jnp.float32),      # fc1 w
        0.05 * jax.random.normal(ks[6], (120,), jnp.float32),          # fc1 b
        0.05 * jax.random.normal(ks[7], (84, 120), jnp.float32),       # fc2 w
        0.05 * jax.random.normal(ks[8], (84,), jnp.float32),           # fc2 b
        0.05 * jax.random.normal(ks[9], (20, 84), jnp.float32),        # fc3 w
        0.05 * jax.random.normal(ks[10], (20,), jnp.float32),          # fc3 b
    )

    out = jax.jit(net_sl_forward)(x, params)
    out = jax.block_until_ready(out)

    ref = net_sl_reference(x, params)
    assert out.shape == (n, 20), out.shape
    assert bool(jnp.allclose(out, ref, atol=1e-4, rtol=1e-4)), "mismatch vs reference"
    print("KERNEL_OK")
</pallas_src>

<mosaic_0001>
module attributes {stable_mosaic.version = 11 : i64} {
  func.func @conv_pool_relu_kernel(%arg0: i32, %arg1: memref<4x32x640xf32, #tpu.memory_space<vmem>>, %arg2: memref<6x32xf32, #tpu.memory_space<vmem>>, %arg3: memref<6x1xf32, #tpu.memory_space<vmem>>, %arg4: memref<6x640xf32, #tpu.memory_space<vmem>>) attributes {dimension_semantics = [#tpu.dimension_semantics<parallel>], iteration_bounds = array<i64: 1>, scalar_prefetch = 0 : i64, scratch_operands = 0 : i64, tpu.core_type = #tpu.core_type<tc>, window_params = [{transform_indices = @transform_0, window_bounds = array<i64: 4, 32, 640>}, {pipeline_mode = #tpu.pipeline_mode<synchronous>, transform_indices = @transform_1, window_bounds = array<i64: 6, 32>}, {pipeline_mode = #tpu.pipeline_mode<synchronous>, transform_indices = @transform_2, window_bounds = array<i64: 6, 1>}, {transform_indices = @transform_3, window_bounds = array<i64: 6, 640>}]} {
    %c0 = arith.constant 0 : index
    %c0_0 = arith.constant 0 : index
    %0 = vector.load %arg2[%c0, %c0_0] : memref<6x32xf32, #tpu.memory_space<vmem>>, vector<6x32xf32>
    %c0_1 = arith.constant 0 : index
    %c0_2 = arith.constant 0 : index
    %c0_3 = arith.constant 0 : index
    %1 = vector.load %arg1[%c0_1, %c0_2, %c0_3] : memref<4x32x640xf32, #tpu.memory_space<vmem>>, vector<1x32x640xf32>
    %2 = vector.shape_cast %1 : vector<1x32x640xf32> to vector<32x640xf32>
    %cst = arith.constant dense<0.000000e+00> : vector<6x640xf32>
    %3 = tpu.matmul %0, %2, %cst {dimension_numbers = #tpu.dot_dimension_numbers<[1], [0], [0], [1], [0, 0, 1, 1], [], []>} : vector<6x32xf32>, vector<32x640xf32>, vector<6x640xf32> -> vector<6x640xf32>
    %c1 = arith.constant 1 : index
    %c0_4 = arith.constant 0 : index
    %c0_5 = arith.constant 0 : index
    %4 = vector.load %arg1[%c1, %c0_4, %c0_5] : memref<4x32x640xf32, #tpu.memory_space<vmem>>, vector<1x32x640xf32>
    %5 = vector.shape_cast %4 : vector<1x32x640xf32> to vector<32x640xf32>
    %cst_6 = arith.constant dense<0.000000e+00> : vector<6x640xf32>
    %6 = tpu.matmul %0, %5, %cst_6 {dimension_numbers = #tpu.dot_dimension_numbers<[1], [0], [0], [1], [0, 0, 1, 1], [], []>} : vector<6x32xf32>, vector<32x640xf32>, vector<6x640xf32> -> vector<6x640xf32>
    %c2 = arith.constant 2 : index
    %c0_7 = arith.constant 0 : index
    %c0_8 = arith.constant 0 : index
    %7 = vector.load %arg1[%c2, %c0_7, %c0_8] : memref<4x32x640xf32, #tpu.memory_space<vmem>>, vector<1x32x640xf32>
    %8 = vector.shape_cast %7 : vector<1x32x640xf32> to vector<32x640xf32>
    %cst_9 = arith.constant dense<0.000000e+00> : vector<6x640xf32>
    %9 = tpu.matmul %0, %8, %cst_9 {dimension_numbers = #tpu.dot_dimension_numbers<[1], [0], [0], [1], [0, 0, 1, 1], [], []>} : vector<6x32xf32>, vector<32x640xf32>, vector<6x640xf32> -> vector<6x640xf32>
    %c3 = arith.constant 3 : index
    %c0_10 = arith.constant 0 : index
    %c0_11 = arith.constant 0 : index
    %10 = vector.load %arg1[%c3, %c0_10, %c0_11] : memref<4x32x640xf32, #tpu.memory_space<vmem>>, vector<1x32x640xf32>
    %11 = vector.shape_cast %10 : vector<1x32x640xf32> to vector<32x640xf32>
    %cst_12 = arith.constant dense<0.000000e+00> : vector<6x640xf32>
    %12 = tpu.matmul %0, %11, %cst_12 {dimension_numbers = #tpu.dot_dimension_numbers<[1], [0], [0], [1], [0, 0, 1, 1], [], []>} : vector<6x32xf32>, vector<32x640xf32>, vector<6x640xf32> -> vector<6x640xf32>
    %13 = arith.maximumf %3, %6 : vector<6x640xf32>
    %14 = arith.maximumf %9, %12 : vector<6x640xf32>
    %15 = arith.maximumf %13, %14 : vector<6x640xf32>
    %c0_13 = arith.constant 0 : index
    %c0_14 = arith.constant 0 : index
    %16 = vector.load %arg3[%c0_13, %c0_14] : memref<6x1xf32, #tpu.memory_space<vmem>>, vector<6x1xf32>
    %17 = vector.broadcast %16 : vector<6x1xf32> to vector<6x640xf32>
    %18 = arith.addf %15, %17 : vector<6x640xf32>
    %cst_15 = arith.constant 0.000000e+00 : f32
    %19 = vector.broadcast %cst_15 : f32 to vector<6x640xf32>
    %20 = arith.maximumf %18, %19 : vector<6x640xf32>
    %c0_16 = arith.constant 0 : index
    %c0_17 = arith.constant 0 : index
    %21 = vector.load %arg4[%c0_16, %c0_17] : memref<6x640xf32, #tpu.memory_space<vmem>>, vector<6x640xf32>
    tpu.vector_store %arg4[%c0_16, %c0_17], %20 {strides = array<i32>} : memref<6x640xf32, #tpu.memory_space<vmem>>, vector<6x640xf32>,
    return
  }
  func.func @transform_0(%arg0: i32) -> (i32, i32, i32) {
    %c0_i32 = arith.constant 0 : i32
    %c0_i32_0 = arith.constant 0 : i32
    %c0_i32_1 = arith.constant 0 : i32
    return %c0_i32, %c0_i32_0, %arg0 : i32, i32, i32
  }
  func.func @transform_1(%arg0: i32) -> (i32, i32) {
    %c0_i32 = arith.constant 0 : i32
    %c0_i32_0 = arith.constant 0 : i32
    %c0_i32_1 = arith.constant 0 : i32
    return %c0_i32, %c0_i32_0 : i32, i32
  }
  func.func @transform_2(%arg0: i32) -> (i32, i32) {
    %c0_i32 = arith.constant 0 : i32
    %c0_i32_0 = arith.constant 0 : i32
    %c0_i32_1 = arith.constant 0 : i32
    return %c0_i32, %c0_i32_0 : i32, i32
  }
  func.func @transform_3(%arg0: i32) -> (i32, i32) {
    %c0_i32 = arith.constant 0 : i32
    %c0_i32_0 = arith.constant 0 : i32
    return %c0_i32, %arg0 : i32, i32
  }
}

module attributes {stable_mosaic.version = 11 : i64} {
  func.func @conv_pool_relu_kernel(%arg0: i32, %arg1: memref<4x152x128xf32, #tpu.memory_space<vmem>>, %arg2: memref<16x152xf32, #tpu.memory_space<vmem>>, %arg3: memref<16x1xf32, #tpu.memory_space<vmem>>, %arg4: memref<16x128xf32, #tpu.memory_space<vmem>>) attributes {dimension_semantics = [#tpu.dimension_semantics<parallel>], iteration_bounds = array<i64: 1>, scalar_prefetch = 0 : i64, scratch_operands = 0 : i64, tpu.core_type = #tpu.core_type<tc>, window_params = [{transform_indices = @transform_0, window_bounds = array<i64: 4, 152, 128>}, {pipeline_mode = #tpu.pipeline_mode<synchronous>, transform_indices = @transform_1, window_bounds = array<i64: 16, 152>}, {pipeline_mode = #tpu.pipeline_mode<synchronous>, transform_indices = @transform_2, window_bounds = array<i64: 16, 1>}, {transform_indices = @transform_3, window_bounds = array<i64: 16, 128>}]} {
    %c0 = arith.constant 0 : index
    %c0_0 = arith.constant 0 : index
    %0 = vector.load %arg2[%c0, %c0_0] : memref<16x152xf32, #tpu.memory_space<vmem>>, vector<16x152xf32>
    %c0_1 = arith.constant 0 : index
    %c0_2 = arith.constant 0 : index
    %c0_3 = arith.constant 0 : index
    %1 = vector.load %arg1[%c0_1, %c0_2, %c0_3] : memref<4x152x128xf32, #tpu.memory_space<vmem>>, vector<1x152x128xf32>
    %2 = vector.shape_cast %1 : vector<1x152x128xf32> to vector<152x128xf32>
    %cst = arith.constant dense<0.000000e+00> : vector<16x128xf32>
    %3 = tpu.matmul %0, %2, %cst {dimension_numbers = #tpu.dot_dimension_numbers<[1], [0], [0], [1], [0, 0, 1, 1], [], []>} : vector<16x152xf32>, vector<152x128xf32>, vector<16x128xf32> -> vector<16x128xf32>
    %c1 = arith.constant 1 : index
    %c0_4 = arith.constant 0 : index
    %c0_5 = arith.constant 0 : index
    %4 = vector.load %arg1[%c1, %c0_4, %c0_5] : memref<4x152x128xf32, #tpu.memory_space<vmem>>, vector<1x152x128xf32>
    %5 = vector.shape_cast %4 : vector<1x152x128xf32> to vector<152x128xf32>
    %cst_6 = arith.constant dense<0.000000e+00> : vector<16x128xf32>
    %6 = tpu.matmul %0, %5, %cst_6 {dimension_numbers = #tpu.dot_dimension_numbers<[1], [0], [0], [1], [0, 0, 1, 1], [], []>} : vector<16x152xf32>, vector<152x128xf32>, vector<16x128xf32> -> vector<16x128xf32>
    %c2 = arith.constant 2 : index
    %c0_7 = arith.constant 0 : index
    %c0_8 = arith.constant 0 : index
    %7 = vector.load %arg1[%c2, %c0_7, %c0_8] : memref<4x152x128xf32, #tpu.memory_space<vmem>>, vector<1x152x128xf32>
    %8 = vector.shape_cast %7 : vector<1x152x128xf32> to vector<152x128xf32>
    %cst_9 = arith.constant dense<0.000000e+00> : vector<16x128xf32>
    %9 = tpu.matmul %0, %8, %cst_9 {dimension_numbers = #tpu.dot_dimension_numbers<[1], [0], [0], [1], [0, 0, 1, 1], [], []>} : vector<16x152xf32>, vector<152x128xf32>, vector<16x128xf32> -> vector<16x128xf32>
    %c3 = arith.constant 3 : index
    %c0_10 = arith.constant 0 : index
    %c0_11 = arith.constant 0 : index
    %10 = vector.load %arg1[%c3, %c0_10, %c0_11] : memref<4x152x128xf32, #tpu.memory_space<vmem>>, vector<1x152x128xf32>
    %11 = vector.shape_cast %10 : vector<1x152x128xf32> to vector<152x128xf32>
    %cst_12 = arith.constant dense<0.000000e+00> : vector<16x128xf32>
    %12 = tpu.matmul %0, %11, %cst_12 {dimension_numbers = #tpu.dot_dimension_numbers<[1], [0], [0], [1], [0, 0, 1, 1], [], []>} : vector<16x152xf32>, vector<152x128xf32>, vector<16x128xf32> -> vector<16x128xf32>
    %13 = arith.maximumf %3, %6 : vector<16x128xf32>
    %14 = arith.maximumf %9, %12 : vector<16x128xf32>
    %15 = arith.maximumf %13, %14 : vector<16x128xf32>
    %c0_13 = arith.constant 0 : index
    %c0_14 = arith.constant 0 : index
    %16 = vector.load %arg3[%c0_13, %c0_14] : memref<16x1xf32, #tpu.memory_space<vmem>>, vector<16x1xf32>
    %17 = vector.broadcast %16 : vector<16x1xf32> to vector<16x128xf32>
    %18 = arith.addf %15, %17 : vector<16x128xf32>
    %cst_15 = arith.constant 0.000000e+00 : f32
    %19 = vector.broadcast %cst_15 : f32 to vector<16x128xf32>
    %20 = arith.maximumf %18, %19 : vector<16x128xf32>
    %c0_16 = arith.constant 0 : index
    %c0_17 = arith.constant 0 : index
    %21 = vector.load %arg4[%c0_16, %c0_17] : memref<16x128xf32, #tpu.memory_space<vmem>>, vector<16x128xf32>
    tpu.vector_store %arg4[%c0_16, %c0_17], %20 {strides = array<i32>} : memref<16x128xf32, #tpu.memory_space<vmem>>, vector<16x128xf32>,
    return
  }
  func.func @transform_0(%arg0: i32) -> (i32, i32, i32) {
    %c0_i32 = arith.constant 0 : i32
    %c0_i32_0 = arith.constant 0 : i32
    %c0_i32_1 = arith.constant 0 : i32
    return %c0_i32, %c0_i32_0, %arg0 : i32, i32, i32
  }
  func.func @transform_1(%arg0: i32) -> (i32, i32) {
    %c0_i32 = arith.constant 0 : i32
    %c0_i32_0 = arith.constant 0 : i32
    %c0_i32_1 = arith.constant 0 : i32
    return %c0_i32, %c0_i32_0 : i32, i32
  }
  func.func @transform_2(%arg0: i32) -> (i32, i32) {
    %c0_i32 = arith.constant 0 : i32
    %c0_i32_0 = arith.constant 0 : i32
    %c0_i32_1 = arith.constant 0 : i32
    return %c0_i32, %c0_i32_0 : i32, i32
  }
  func.func @transform_3(%arg0: i32) -> (i32, i32) {
    %c0_i32 = arith.constant 0 : i32
    %c0_i32_0 = arith.constant 0 : i32
    return %c0_i32, %arg0 : i32, i32
  }
}

module attributes {stable_mosaic.version = 11 : i64} {
  func.func @classifier_kernel(%arg0: i32, %arg1: memref<8x768xf32, #tpu.memory_space<vmem>>, %arg2: memref<768x128xf32, #tpu.memory_space<vmem>>, %arg3: memref<1x128xf32, #tpu.memory_space<vmem>>, %arg4: memref<128x128xf32, #tpu.memory_space<vmem>>, %arg5: memref<1x128xf32, #tpu.memory_space<vmem>>, %arg6: memref<128x128xf32, #tpu.memory_space<vmem>>, %arg7: memref<1x128xf32, #tpu.memory_space<vmem>>, %arg8: memref<8x20xf32, #tpu.memory_space<vmem>>) attributes {dimension_semantics = [#tpu.dimension_semantics<parallel>], iteration_bounds = array<i64: 1>, scalar_prefetch = 0 : i64, scratch_operands = 0 : i64, tpu.core_type = #tpu.core_type<tc>, window_params = [{transform_indices = @transform_0, window_bounds = array<i64: 8, 768>}, {pipeline_mode = #tpu.pipeline_mode<synchronous>, transform_indices = @transform_1, window_bounds = array<i64: 768, 128>}, {pipeline_mode = #tpu.pipeline_mode<synchronous>, transform_indices = @transform_2, window_bounds = array<i64: 1, 128>}, {pipeline_mode = #tpu.pipeline_mode<synchronous>, transform_indices = @transform_3, window_bounds = array<i64: 128, 128>}, {pipeline_mode = #tpu.pipeline_mode<synchronous>, transform_indices = @transform_4, window_bounds = array<i64: 1, 128>}, {pipeline_mode = #tpu.pipeline_mode<synchronous>, transform_indices = @transform_5, window_bounds = array<i64: 128, 128>}, {pipeline_mode = #tpu.pipeline_mode<synchronous>, transform_indices = @transform_6, window_bounds = array<i64: 1, 128>}, {transform_indices = @transform_7, window_bounds = array<i64: 8, 20>}]} {
    %c0 = arith.constant 0 : index
    %c0_0 = arith.constant 0 : index
    %0 = vector.load %arg1[%c0, %c0_0] : memref<8x768xf32, #tpu.memory_space<vmem>>, vector<8x768xf32>
    %c0_1 = arith.constant 0 : index
    %c0_2 = arith.constant 0 : index
    %1 = vector.load %arg2[%c0_1, %c0_2] : memref<768x128xf32, #tpu.memory_space<vmem>>, vector<768x128xf32>
    %cst = arith.constant dense<0.000000e+00> : vector<8x128xf32>
    %2 = tpu.matmul %0, %1, %cst {dimension_numbers = #tpu.dot_dimension_numbers<[1], [0], [0], [1], [0, 0, 1, 1], [], []>} : vector<8x768xf32>, vector<768x128xf32>, vector<8x128xf32> -> vector<8x128xf32>
    %c0_3 = arith.constant 0 : index
    %c0_4 = arith.constant 0 : index
    %3 = vector.load %arg3[%c0_3, %c0_4] : memref<1x128xf32, #tpu.memory_space<vmem>>, vector<1x128xf32>
    %4 = vector.broadcast %3 : vector<1x128xf32> to vector<8x128xf32>
    %5 = arith.addf %2, %4 : vector<8x128xf32>
    %cst_5 = arith.constant 0.000000e+00 : f32
    %6 = vector.broadcast %cst_5 : f32 to vector<8x128xf32>
    %7 = arith.maximumf %5, %6 : vector<8x128xf32>
    %c0_6 = arith.constant 0 : index
    %c0_7 = arith.constant 0 : index
    %8 = vector.load %arg4[%c0_6, %c0_7] : memref<128x128xf32, #tpu.memory_space<vmem>>, vector<128x128xf32>
    %cst_8 = arith.constant dense<0.000000e+00> : vector<8x128xf32>
    %9 = tpu.matmul %7, %8, %cst_8 {dimension_numbers = #tpu.dot_dimension_numbers<[1], [0], [0], [1], [0, 0, 1, 1], [], []>} : vector<8x128xf32>, vector<128x128xf32>, vector<8x128xf32> -> vector<8x128xf32>
    %c0_9 = arith.constant 0 : index
    %c0_10 = arith.constant 0 : index
    %10 = vector.load %arg5[%c0_9, %c0_10] : memref<1x128xf32, #tpu.memory_space<vmem>>, vector<1x128xf32>
    %11 = vector.broadcast %10 : vector<1x128xf32> to vector<8x128xf32>
    %12 = arith.addf %9, %11 : vector<8x128xf32>
    %cst_11 = arith.constant 0.000000e+00 : f32
    %13 = vector.broadcast %cst_11 : f32 to vector<8x128xf32>
    %14 = arith.maximumf %12, %13 : vector<8x128xf32>
    %c0_12 = arith.constant 0 : index
    %c0_13 = arith.constant 0 : index
    %15 = vector.load %arg6[%c0_12, %c0_13] : memref<128x128xf32, #tpu.memory_space<vmem>>, vector<128x128xf32>
    %cst_14 = arith.constant dense<0.000000e+00> : vector<8x128xf32>
    %16 = tpu.matmul %14, %15, %cst_14 {dimension_numbers = #tpu.dot_dimension_numbers<[1], [0], [0], [1], [0, 0, 1, 1], [], []>} : vector<8x128xf32>, vector<128x128xf32>, vector<8x128xf32> -> vector<8x128xf32>
    %c0_15 = arith.constant 0 : index
    %c0_16 = arith.constant 0 : index
    %17 = vector.load %arg7[%c0_15, %c0_16] : memref<1x128xf32, #tpu.memory_space<vmem>>, vector<1x128xf32>
    %18 = vector.broadcast %17 : vector<1x128xf32> to vector<8x128xf32>
    %19 = arith.addf %16, %18 : vector<8x128xf32>
    %cst_17 = arith.constant dense<0xFF800000> : vector<8xf32>
    %20 = vector.multi_reduction <maximumf>, %19, %cst_17 [1] : vector<8x128xf32> to vector<8xf32>
    %21 = vector.shape_cast %20 : vector<8xf32> to vector<8x1xf32>
    %22 = vector.broadcast %21 : vector<8x1xf32> to vector<8x128xf32>
    %23 = arith.subf %19, %22 : vector<8x128xf32>
    %24 = math.exp %23 : vector<8x128xf32>
    %cst_18 = arith.constant dense<0.000000e+00> : vector<8xf32>
    %25 = vector.multi_reduction <add>, %24, %cst_18 [1] : vector<8x128xf32> to vector<8xf32>
    %26 = vector.shape_cast %25 : vector<8xf32> to vector<8x1xf32>
    %27 = vector.broadcast %26 : vector<8x1xf32> to vector<8x128xf32>
    %28 = arith.divf %24, %27 : vector<8x128xf32>
    %29 = vector.extract_strided_slice %28 {offsets = [0, 0], sizes = [8, 20], strides = [1, 1]} : vector<8x128xf32> to vector<8x20xf32>
    %c0_19 = arith.constant 0 : index
    %c0_20 = arith.constant 0 : index
    %30 = vector.load %arg8[%c0_19, %c0_20] : memref<8x20xf32, #tpu.memory_space<vmem>>, vector<8x20xf32>
    tpu.vector_store %arg8[%c0_19, %c0_20], %29 {strides = array<i32>} : memref<8x20xf32, #tpu.memory_space<vmem>>, vector<8x20xf32>,
    return
  }
  func.func @transform_0(%arg0: i32) -> (i32, i32) {
    %c0_i32 = arith.constant 0 : i32
    %c0_i32_0 = arith.constant 0 : i32
    return %arg0, %c0_i32 : i32, i32
  }
  func.func @transform_1(%arg0: i32) -> (i32, i32) {
    %c0_i32 = arith.constant 0 : i32
    %c0_i32_0 = arith.constant 0 : i32
    %c0_i32_1 = arith.constant 0 : i32
    return %c0_i32, %c0_i32_0 : i32, i32
  }
  func.func @transform_2(%arg0: i32) -> (i32, i32) {
    %c0_i32 = arith.constant 0 : i32
    %c0_i32_0 = arith.constant 0 : i32
    %c0_i32_1 = arith.constant 0 : i32
    return %c0_i32, %c0_i32_0 : i32, i32
  }
  func.func @transform_3(%arg0: i32) -> (i32, i32) {
    %c0_i32 = arith.constant 0 : i32
    %c0_i32_0 = arith.constant 0 : i32
    %c0_i32_1 = arith.constant 0 : i32
    return %c0_i32, %c0_i32_0 : i32, i32
  }
  func.func @transform_4(%arg0: i32) -> (i32, i32) {
    %c0_i32 = arith.constant 0 : i32
    %c0_i32_0 = arith.constant 0 : i32
    %c0_i32_1 = arith.constant 0 : i32
    return %c0_i32, %c0_i32_0 : i32, i32
  }
  func.func @transform_5(%arg0: i32) -> (i32, i32) {
    %c0_i32 = arith.constant 0 : i32
    %c0_i32_0 = arith.constant 0 : i32
    %c0_i32_1 = arith.constant 0 : i32
    return %c0_i32, %c0_i32_0 : i32, i32
  }
  func.func @transform_6(%arg0: i32) -> (i32, i32) {
    %c0_i32 = arith.constant 0 : i32
    %c0_i32_0 = arith.constant 0 : i32
    %c0_i32_1 = arith.constant 0 : i32
    return %c0_i32, %c0_i32_0 : i32, i32
  }
  func.func @transform_7(%arg0: i32) -> (i32, i32) {
    %c0_i32 = arith.constant 0 : i32
    %c0_i32_0 = arith.constant 0 : i32
    return %arg0, %c0_i32 : i32, i32
  }
}

</mosaic_0001>

<bundles_post_ra>
// kernel: net_sl_forward.3
= control target key start
LH: loop header
LB: loop body
LE: loop exit
PB: predicated region body
PF: predicated region fallthrough
CT: control target
= control target key end

     0   :  { %vm35_vm0 = vcmask 261120   ;;  %s948_s0 = inlined_call_operand.vmem [shape: f32[4,32,640], index: 0, kind: input, shape index: {}]   ;;  %s949_s1 = inlined_call_operand.vmem [shape: f32[6,32], index: 1, kind: input, shape index: {}]   ;;  %s950_s2 = inlined_call_operand.vmem [shape: f32[6,1], index: 2, kind: input, shape index: {}]   ;;  %s951_s3 = inlined_call_operand.vmem [shape: f32[6,640], index: 3, kind: output, shape index: {}]  }
   0x1   :  { %v30_v0 = vld [vmem:[%s948_s0 + $0x78] sm:$0xff]  ;;  %v31_v1 = vld [vmem:[%s948_s0 + $0x80] sm:$0xff]  ;;  %v32_v2 = vld [vmem:[%s948_s0 + $0x88] sm:$0xff] }
   0x2   :  { %51 = vmatpush.msra.mxu0 %v30_v0  ;;  %71 = vmatpush.msra.mxu1 %v31_v1  ;;  %v33_v3 = vld [vmem:[%s948_s0 + $0x90] sm:$0xff]  ;;  %v26_v5 = vld [vmem:[%s948_s0 + $0x58] sm:$0xff]  ;;  %v27_v6 = vld [vmem:[%s948_s0 + $0x60] sm:$0xff] }
   0x3   :  { %v25_v4 = vld [vmem:[%s948_s0 + $0x50] sm:$0xff]  ;;  %91 = vmatpush.msra.mxu2 %v32_v2  ;;  %111 = vmatpush.msra.mxu3 %v33_v3  ;;  %v28_v7 = vld [vmem:[%s948_s0 + $0x68] sm:$0xff]  ;;  %v22_v10 = vld [vmem:[%s948_s0 + $0x38] sm:$0xff] }
   0x4   :  { %v20_v8 = vld [vmem:[%s948_s0 + $0x28] sm:$0xff]  ;;  %52 = vmatpush.msra.mxu0 %v25_v4  ;;  %72 = vmatpush.msra.mxu1 %v26_v5  ;;  %v21_v9 = vld [vmem:[%s948_s0 + $0x30] sm:$0xff]  ;;  %v23_v11 = vld [vmem:[%s948_s0 + $0x40] sm:$0xff] }
   0x5   :  { %92 = vmatpush.msra.mxu2 %v27_v6  ;;  %112 = vmatpush.msra.mxu3 %v28_v7  ;;  %v15_v12 = vld [vmem:[%s948_s0] sm:$0xff]  ;;  %v16_v13 = vld [vmem:[%s948_s0 + $0x8] sm:$0xff]  ;;  %v17_v14 = vld [vmem:[%s948_s0 + $0x10] sm:$0xff] }
   0x6   :  { %53 = vmatpush.msra.mxu0 %v20_v8  ;;  %73 = vmatpush.msra.mxu1 %v21_v9  ;;  %v18_v15 = vld [vmem:[%s948_s0 + $0x18] sm:$0xff]  ;;  %v696_v16 = vld [vmem:[%s949_s1] sm:$0x3f]  ;;  %v564_v18 = vld [vmem:[%s948_s0 + $0x128] sm:$0xff] }
   0x7   :  { %93 = vmatpush.msra.mxu2 %v22_v10  ;;  %113 = vmatpush.msra.mxu3 %v23_v11  ;;  %v563_v17 = vld [vmem:[%s948_s0 + $0x120] sm:$0xff]  ;;  %v34_v19 = vld [vmem:[%s948_s0 + $0x98] sm:$0xff]  ;;  %v29_v23 = vld [vmem:[%s948_s0 + $0x70] sm:$0xff] }
   0x8   :  { %54 = vmatpush.msra.mxu0 %v15_v12  ;;  %74 = vmatpush.msra.mxu1 %v16_v13  ;;  %v562_v20 = vld [vmem:[%s948_s0 + $0x118] sm:$0xff]  ;;  %v559_v22 = vld [vmem:[%s948_s0 + $0x100] sm:$0xff]  ;;  %v557_v24 = vld [vmem:[%s948_s0 + $0xf0] sm:$0xff] }
   0x9   :  { %94 = vmatpush.msra.mxu2 %v17_v14  ;;  %114 = vmatpush.msra.mxu3 %v18_v15  ;;  %v558_v21 = vld [vmem:[%s948_s0 + $0xf8] sm:$0xff]  ;;  %v553_v25 = vld [vmem:[%s948_s0 + $0xd0] sm:$0xff]  ;;  %v24_v27 = vld [vmem:[%s948_s0 + $0x48] sm:$0xff] }
   0xa   :  { %542 = vmatmul.msk.f32.vlgmr.msra.gmra.mxu0 %vm35_vm0, %v696_v16  ;;  %543 = vmatmul.msk.f32.vlgmr.msra.gmra.mxu1 %vm35_vm0, %v696_v16  ;;  %v554_v26 = vld [vmem:[%s948_s0 + $0xd8] sm:$0xff]  ;;  %v552_v28 = vld [vmem:[%s948_s0 + $0xc8] sm:$0xff]  ;;  %v549_v30 = vld [vmem:[%s948_s0 + $0xb0] sm:$0xff] }
   0xb   :  { %544 = vmatmul.msk.f32.vlgmr.msra.gmra.mxu2 %vm35_vm0, %v696_v16  ;;  %545 = vmatmul.msk.f32.vlgmr.msra.gmra.mxu3 %vm35_vm0, %v696_v16  ;;  %v548_v29 = vld [vmem:[%s948_s0 + $0xa8] sm:$0xff]  ;;  %v19_v31 = vld [vmem:[%s948_s0 + $0x20] sm:$0xff]  ;;  %v587_v33 = vld [vmem:[%s948_s0 + $0x1b8] sm:$0xff] }
   0xc   :  { %192 = vmatpush.msrb.mxu2 %v563_v17  ;;  %212 = vmatpush.msrb.mxu3 %v564_v18  ;;  %v547_v32 = vld [vmem:[%s948_s0 + $0xa0] sm:$0xff]  ;;  %v565_v35 = vld [vmem:[%s948_s0 + $0x130] sm:$0xff]  ;;  %v566_v36 = vld [vmem:[%s948_s0 + $0x138] sm:$0xff] }
   0xd   :  { %131 = vmatpush.msrb.mxu0 %v34_v19  ;;  %172 = vmatpush.msrb.mxu1 %v562_v20  ;;  %v588_v34 = vld [vmem:[%s948_s0 + $0x1c0] sm:$0xff]  ;;  %v582_v37 = vld [vmem:[%s948_s0 + $0x190] sm:$0xff]  ;;  %v583_v38 = vld [vmem:[%s948_s0 + $0x198] sm:$0xff]  ;;  %v624_v19 = vmov 0  }
   0xe   :  { %193 = vmatpush.msrb.mxu2 %v558_v21  ;;  %213 = vmatpush.msrb.mxu3 %v559_v22  ;;  %v560_v39 = vld [vmem:[%s948_s0 + $0x108] sm:$0xff]  ;;  %v561_v40 = vld [vmem:[%s948_s0 + $0x110] sm:$0xff]  ;;  %v555_v43 = vld [vmem:[%s948_s0 + $0xe0] sm:$0xff] }
   0xf   :  { %132 = vmatpush.msrb.mxu0 %v29_v23  ;;  %173 = vmatpush.msrb.mxu1 %v557_v24  ;;  %v577_v41 = vld [vmem:[%s948_s0 + $0x168] sm:$0xff]  ;;  %v578_v42 = vld [vmem:[%s948_s0 + $0x170] sm:$0xff]  ;;  %v572_v45 = vld [vmem:[%s948_s0 + $0x140] sm:$0xff] }
  0x10   :  { %194 = vmatpush.msrb.mxu2 %v553_v25  ;;  %214 = vmatpush.msrb.mxu3 %v554_v26  ;;  %v556_v44 = vld [vmem:[%s948_s0 + $0xe8] sm:$0xff]  ;;  %v550_v47 = vld [vmem:[%s948_s0 + $0xb8] sm:$0xff]  ;;  %v551_v48 = vld [vmem:[%s948_s0 + $0xc0] sm:$0xff] }
  0x11   :  { %133 = vmatpush.msrb.mxu0 %v24_v27  ;;  %174 = vmatpush.msrb.mxu1 %v552_v28  ;;  %v573_v46 = vld [vmem:[%s948_s0 + $0x148] sm:$0xff]  ;;  %v591_v49 = vld [vmem:[%s948_s0 + $0x1d8] sm:$0xff]  ;;  %v590_v52 = vld [vmem:[%s948_s0 + $0x1d0] sm:$0xff] }
  0x12   :  { %195 = vmatpush.msrb.mxu2 %v548_v29  ;;  %215 = vmatpush.msrb.mxu3 %v549_v30  ;;  %v612_v50 = vld [vmem:[%s948_s0 + $0x258] sm:$0xff]  ;;  %v589_v51 = vld [vmem:[%s948_s0 + $0x1c8] sm:$0xff]  ;;  %v586_v53 = vld [vmem:[%s948_s0 + $0x1b0] sm:$0xff] }
  0x13   :  { %134 = vmatpush.msrb.mxu0 %v19_v31  ;;  %175 = vmatpush.msrb.mxu1 %v547_v32  ;;  %v607_v54 = vld [vmem:[%s948_s0 + $0x230] sm:$0xff]  ;;  %v584_v55 = vld [vmem:[%s948_s0 + $0x1a0] sm:$0xff]  ;;  %v585_v56 = vld [vmem:[%s948_s0 + $0x1a8] sm:$0xff] }
  0x14   :  { %546 = vmatmul.msk.f32.vlgmr.msrb.gmra.mxu0 %vm35_vm0, %v696_v16  ;;  %567 = vmatmul.msk.f32.vlgmr.msrb.gmra.mxu1 %vm35_vm0, %v696_v16  ;;  %v581_v57 = vld [vmem:[%s948_s0 + $0x188] sm:$0xff]  ;;  %v579_v59 = vld [vmem:[%s948_s0 + $0x178] sm:$0xff]  ;;  %v580_v60 = vld [vmem:[%s948_s0 + $0x180] sm:$0xff] }
  0x15   :  { %568 = vmatmul.msk.f32.vlgmr.msrb.gmra.mxu2 %vm35_vm0, %v696_v16  ;;  %569 = vmatmul.msk.f32.vlgmr.msrb.gmra.mxu3 %vm35_vm0, %v696_v16  ;;  %v602_v58 = vld [vmem:[%s948_s0 + $0x208] sm:$0xff]  ;;  %v576_v61 = vld [vmem:[%s948_s0 + $0x160] sm:$0xff]  ;;  %v574_v63 = vld [vmem:[%s948_s0 + $0x150] sm:$0xff] }
  0x16   :  { %293 = vmatpush.msra.mxu2 %v587_v33  ;;  %313 = vmatpush.msra.mxu3 %v588_v34  ;;  %v597_v62 = vld [vmem:[%s948_s0 + $0x1e0] sm:$0xff]  ;;  %v575_v0 = vld [vmem:[%s948_s0 + $0x158] sm:$0xff]  ;;  %v615_v1 = vld [vmem:[%s948_s0 + $0x270] sm:$0xff] }
  0x17   :  { %232 = vmatpush.msra.mxu0 %v565_v35  ;;  %252 = vmatpush.msra.mxu1 %v566_v36  ;;  %v616_v2 = vld [vmem:[%s948_s0 + $0x278] sm:$0xff]  ;;  %v613_v3 = vld [vmem:[%s948_s0 + $0x260] sm:$0xff]  ;;  %v614_v4 = vld [vmem:[%s948_s0 + $0x268] sm:$0xff] }
  0x18   :  { %294 = vmatpush.msra.mxu2 %v582_v37  ;;  %314 = vmatpush.msra.mxu3 %v583_v38  ;;  %v610_v5 = vld [vmem:[%s948_s0 + $0x248] sm:$0xff]  ;;  %v611_v6 = vld [vmem:[%s948_s0 + $0x250] sm:$0xff]  ;;  %v608_v7 = vld [vmem:[%s948_s0 + $0x238] sm:$0xff] }
  0x19   :  { %233 = vmatpush.msra.mxu0 %v560_v39  ;;  %253 = vmatpush.msra.mxu1 %v561_v40  ;;  %v609_v8 = vld [vmem:[%s948_s0 + $0x240] sm:$0xff]  ;;  %v606_v10 = vld [vmem:[%s948_s0 + $0x228] sm:$0xff]  ;;  %v603_v11 = vld [vmem:[%s948_s0 + $0x210] sm:$0xff] }
  0x1a   :  { %295 = vmatpush.msra.mxu2 %v577_v41  ;;  %315 = vmatpush.msra.mxu3 %v578_v42  ;;  %v605_v9 = vld [vmem:[%s948_s0 + $0x220] sm:$0xff]  ;;  %v604_v12 = vld [vmem:[%s948_s0 + $0x218] sm:$0xff]  ;;  %v598_v15 = vld [vmem:[%s948_s0 + $0x1e8] sm:$0xff] }
  0x1b   :  { %234 = vmatpush.msra.mxu0 %v555_v43  ;;  %254 = vmatpush.msra.mxu1 %v556_v44  ;;  %v600_v13 = vld [vmem:[%s948_s0 + $0x1f8] sm:$0xff]  ;;  %v601_v14 = vld [vmem:[%s948_s0 + $0x200] sm:$0xff]  ;;  %v599_v17 = vld [vmem:[%s948_s0 + $0x1f0] sm:$0xff] }
  0x1c   :  { %296 = vmatpush.msra.mxu2 %v572_v45  ;;  %316 = vmatpush.msra.mxu3 %v573_v46  ;;  %v517_v18 = vld [vmem:[%s950_s2] sm:$0x3f] }
  0x1d   :  { %235 = vmatpush.msra.mxu0 %v550_v47  ;;  %255 = vmatpush.msra.mxu1 %v551_v48 }
  0x1e   :  { %570 = vmatmul.msk.f32.vlgmr.msra.gmra.mxu0 %vm35_vm0, %v696_v16  ;;  %571 = vmatmul.msk.f32.vlgmr.msra.gmra.mxu1 %vm35_vm0, %v696_v16 }
  0x1f   :  { %592 = vmatmul.msk.f32.vlgmr.msra.gmra.mxu2 %vm35_vm0, %v696_v16  ;;  %593 = vmatmul.msk.f32.vlgmr.msra.gmra.mxu3 %vm35_vm0, %v696_v16 }
  0x20   :  { %373 = vmatpush.msrb.mxu2 %v591_v49  ;;  %414 = vmatpush.msrb.mxu3 %v612_v50 }
  0x21   :  { %333 = vmatpush.msrb.mxu0 %v589_v51  ;;  %353 = vmatpush.msrb.mxu1 %v590_v52 }
  0x22   :  { %374 = vmatpush.msrb.mxu2 %v586_v53  ;;  %415 = vmatpush.msrb.mxu3 %v607_v54 }
  0x23   :  { %334 = vmatpush.msrb.mxu0 %v584_v55  ;;  %354 = vmatpush.msrb.mxu1 %v585_v56 }
  0x24   :  { %375 = vmatpush.msrb.mxu2 %v581_v57  ;;  %416 = vmatpush.msrb.mxu3 %v602_v58 }
  0x25   :  { %335 = vmatpush.msrb.mxu0 %v579_v59  ;;  %355 = vmatpush.msrb.mxu1 %v580_v60 }
  0x26   :  { %376 = vmatpush.msrb.mxu2 %v576_v61  ;;  %417 = vmatpush.msrb.mxu3 %v597_v62 }
  0x27   :  { %336 = vmatpush.msrb.mxu0 %v574_v63  ;;  %356 = vmatpush.msrb.mxu1 %v575_v0 }
  0x28   :  { %594 = vmatmul.msk.f32.vlgmr.msrb.gmra.mxu0 %vm35_vm0, %v696_v16  ;;  %595 = vmatmul.msk.f32.vlgmr.msrb.gmra.mxu1 %vm35_vm0, %v696_v16 }
  0x29   :  { %596 = vmatmul.msk.f32.vlgmr.msrb.gmra.mxu2 %vm35_vm0, %v696_v16  ;;  %617 = vmatmul.msk.f32.vlgmr.msrb.gmra.mxu3 %vm35_vm0, %v696_v16 }
  0x2a   :  { %474 = vmatpush.msra.mxu2 %v615_v1  ;;  %494 = vmatpush.msra.mxu3 %v616_v2 }
  0x2b   :  { %434 = vmatpush.msra.mxu0 %v613_v3  ;;  %454 = vmatpush.msra.mxu1 %v614_v4 }
  0x2c   :  { %475 = vmatpush.msra.mxu2 %v610_v5  ;;  %495 = vmatpush.msra.mxu3 %v611_v6 }
  0x2d   :  { %435 = vmatpush.msra.mxu0 %v608_v7  ;;  %455 = vmatpush.msra.mxu1 %v609_v8 }
  0x2e   :  { %476 = vmatpush.msra.mxu2 %v605_v9  ;;  %496 = vmatpush.msra.mxu3 %v606_v10 }
  0x2f   :  { %436 = vmatpush.msra.mxu0 %v603_v11  ;;  %456 = vmatpush.msra.mxu1 %v604_v12 }
  0x30   :  { %477 = vmatpush.msra.mxu2 %v600_v13  ;;  %497 = vmatpush.msra.mxu3 %v601_v14 }
  0x31   :  { %437 = vmatpush.msra.mxu0 %v598_v15  ;;  %457 = vmatpush.msra.mxu1 %v599_v17 }
  0x32   :  { %618 = vmatmul.msk.f32.vlgmr.msra.gmra.mxu0 %vm35_vm0, %v696_v16  ;;  %619 = vmatmul.msk.f32.vlgmr.msra.gmra.mxu1 %vm35_vm0, %v696_v16 }
  0x33   :  { %620 = vmatmul.msk.f32.vlgmr.msra.gmra.mxu2 %vm35_vm0, %v696_v16  ;;  %621 = vmatmul.msk.f32.vlgmr.msra.gmra.mxu3 %vm35_vm0, %v696_v16 }
  0x34   :  { %623 = vset.pattern.permute.xlu0 %v624_v19 }
  0x35   :  { %520 = vperm.xlu0 %623, %v517_v18  }
  0x87   :  { %v56_v20 = vpop.f32.mrf.mxu0  ;;  %v76_v21 = vpop.f32.mrf.mxu1 }
  0x8e   :  { %v96_v22 = vpop.f32.mrf.mxu2  ;;  %v116_v23 = vpop.f32.mrf.mxu3 }
  0x91   :  { %v136_v24 = vpop.f32.mrf.mxu0  ;;  %v177_v25 = vpop.f32.mrf.mxu1 }
  0x92   :  { %v502_v16 = vmax.f32 %v56_v20, %v177_v25 }
  0x98   :  { %v197_v26 = vpop.f32.mrf.mxu2  ;;  %v217_v27 = vpop.f32.mrf.mxu3 }
  0x99   :  { %v503_v41 = vmax.f32 %v76_v21, %v197_v26  ;;  %v504_v42 = vmax.f32 %v96_v22, %v217_v27 }
  0x9b   :  { %v237_v28 = vpop.f32.mrf.mxu0  ;;  %v257_v29 = vpop.f32.mrf.mxu1 }
  0x9c   :  { %v505_v55 = vmax.f32 %v116_v23, %v237_v28  ;;  %v506_v56 = vmax.f32 %v136_v24, %v257_v29 }
  0xa2   :  { %v298_v30 = vpop.f32.mrf.mxu2  ;;  %v318_v31 = vpop.f32.mrf.mxu3 }
  0xa5   :  { %v338_v32 = vpop.f32.mrf.mxu0  ;;  %v358_v33 = vpop.f32.mrf.mxu1 }
  0xa7   :  { %v521_v37 = vpop.permute.xlu0 %520 }
  0xac   :  { %v378_v34 = vpop.f32.mrf.mxu2  ;;  %v419_v35 = vpop.f32.mrf.mxu3 }
  0xad   :  { %v507_v36 = vmax.f32 %v298_v30, %v419_v35 }
  0xaf   :  { %v512_v38 = vmax.f32 %v502_v16, %v507_v36  ;;  %v439_v39 = vpop.f32.mrf.mxu0  ;;  %v459_v40 = vpop.f32.mrf.mxu1 }
  0xb0   :  { %v508_v43 = vmax.f32 %v318_v31, %v439_v39  ;;  %v509_v44 = vmax.f32 %v338_v32, %v459_v40 }
  0xb1   :  { %v523_v45 = vadd.f32 %v521_v37, %v512_v38 }
  0xb2   :  { %v513_v46 = vmax.f32 %v503_v41, %v508_v43  ;;  %v514_v47 = vmax.f32 %v504_v42, %v509_v44 }
  0xb3   :  { %v528_v48 = vmax.f32 %v523_v45, 0.0 }
  0xb4   :  { %v524_v49 = vadd.f32 %v521_v37, %v513_v46  ;;  %v525_v50 = vadd.f32 %v521_v37, %v514_v47 }
  0xb5   :  { %533 = vst [vmem:[%s951_s3] sm:$0x3f] %v528_v48 }
  0xb6   :  { %v529_v51 = vmax.f32 %v524_v49, 0.0  ;;  %v530_v52 = vmax.f32 %v525_v50, 0.0  ;;  %v479_v53 = vpop.f32.mrf.mxu2  ;;  %v499_v54 = vpop.f32.mrf.mxu3 }
  0xb7   :  { %v510_v57 = vmax.f32 %v358_v33, %v479_v53  ;;  %v511_v58 = vmax.f32 %v378_v34, %v499_v54 }
  0xb8   :  { %534 = vst [vmem:[%s951_s3 + $0x8] sm:$0x3f] %v529_v51 }
  0xb9   :  { %535 = vst [vmem:[%s951_s3 + $0x10] sm:$0x3f] %v530_v52  ;;  %v515_v59 = vmax.f32 %v505_v55, %v510_v57  ;;  %v516_v60 = vmax.f32 %v506_v56, %v511_v58 }
  0xbb   :  { %v526_v61 = vadd.f32 %v521_v37, %v515_v59  ;;  %v527_v62 = vadd.f32 %v521_v37, %v516_v60 }
  0xbd   :  { %v531_v63 = vmax.f32 %v526_v61, 0.0  ;;  %v532_v0 = vmax.f32 %v527_v62, 0.0 }
  0xbf   :  { %536 = vst [vmem:[%s951_s3 + $0x18] sm:$0x3f] %v531_v63 }
  0xc0   :  { %537 = vst [vmem:[%s951_s3 + $0x20] sm:$0x3f] %v532_v0 }

// kernel: net_sl_forward.4
= control target key start
LH: loop header
LB: loop body
LE: loop exit
PB: predicated region body
PF: predicated region fallthrough
CT: control target
= control target key end

     0   :  { %vm37_vm0 = vcmask 195584   ;;  %s694_s0 = inlined_call_operand.vmem [shape: f32[4,152,128], index: 0, kind: input, shape index: {}]   ;;  %s695_s1 = inlined_call_operand.vmem [shape: f32[16,152], index: 1, kind: input, shape index: {}]   ;;  %s696_s2 = inlined_call_operand.vmem [shape: f32[16,1], index: 2, kind: input, shape index: {}]   ;;  %s697_s3 = inlined_call_operand.vmem [shape: f32[16,128], index: 3, kind: output, shape index: {}]  }
   0x1   :  { %v33_v0 = vld [vmem:[%s694_s0 + $0x78] sm:$0xff]  ;;  %v36_v1 = vld [vmem:[%s694_s0 + $0x90] sm:$0xff]  ;;  %v422_v3 = vld [vmem:[%s694_s0 + $0x128] sm:$0xff] }
   0x2   :  { %v333_v2 = vld [vmem:[%s694_s0 + $0x110] sm:$0xff]  ;;  %44 = vmatpush.msra.mxu0 %v33_v0  ;;  %80 = vmatpush.msra.mxu1 %v36_v1  ;;  %v35_v5 = vld [vmem:[%s694_s0 + $0x88] sm:$0xff]  ;;  %v437_v7 = vld [vmem:[%s694_s0 + $0x120] sm:$0xff] }
   0x3   :  { %v32_v4 = vld [vmem:[%s694_s0 + $0x70] sm:$0xff]  ;;  %110 = vmatpush.msra.mxu2 %v333_v2  ;;  %381 = vmatpush.msra.mxu3 %v422_v3  ;;  %v332_v6 = vld [vmem:[%s694_s0 + $0x108] sm:$0xff]  ;;  %v34_v9 = vld [vmem:[%s694_s0 + $0x80] sm:$0xff] }
   0x4   :  { %v31_v8 = vld [vmem:[%s694_s0 + $0x68] sm:$0xff]  ;;  %45 = vmatpush.msra.mxu0 %v32_v4  ;;  %81 = vmatpush.msra.mxu1 %v35_v5  ;;  %v331_v10 = vld [vmem:[%s694_s0 + $0x100] sm:$0xff]  ;;  %v451_v11 = vld [vmem:[%s694_s0 + $0x118] sm:$0xff] }
   0x5   :  { %111 = vmatpush.msra.mxu2 %v332_v6  ;;  %382 = vmatpush.msra.mxu3 %v437_v7  ;;  %v354_v12 = vld [vmem:[%s694_s0 + $0x1a8] sm:$0xff]  ;;  %v357_v13 = vld [vmem:[%s694_s0 + $0x1c0] sm:$0xff]  ;;  %v330_v15 = vld [vmem:[%s694_s0 + $0xf8] sm:$0xff] }
   0x6   :  { %46 = vmatpush.msra.mxu0 %v31_v8  ;;  %82 = vmatpush.msra.mxu1 %v34_v9  ;;  %v30_v14 = vld [vmem:[%s694_s0 + $0x60] sm:$0xff]  ;;  %v356_v17 = vld [vmem:[%s694_s0 + $0x1b8] sm:$0xff]  ;;  %v329_v19 = vld [vmem:[%s694_s0 + $0xf0] sm:$0xff] }
   0x7   :  { %112 = vmatpush.msra.mxu2 %v331_v10  ;;  %383 = vmatpush.msra.mxu3 %v451_v11  ;;  %v353_v16 = vld [vmem:[%s694_s0 + $0x1a0] sm:$0xff]  ;;  %v29_v18 = vld [vmem:[%s694_s0 + $0x58] sm:$0xff]  ;;  %v355_v21 = vld [vmem:[%s694_s0 + $0x1b0] sm:$0xff] }
   0x8   :  { %176 = vmatpush.msrb.mxu1 %v354_v12  ;;  %47 = vmatpush.msra.mxu0 %v30_v14  ;;  %v352_v20 = vld [vmem:[%s694_s0 + $0x198] sm:$0xff]  ;;  %v28_v22 = vld [vmem:[%s694_s0 + $0x50] sm:$0xff]  ;;  %v328_v23 = vld [vmem:[%s694_s0 + $0xe8] sm:$0xff] }
   0x9   :  { %212 = vmatpush.msrb.mxu3 %v357_v13  ;;  %113 = vmatpush.msra.mxu2 %v330_v15  ;;  %v494_v24 = vld [vmem:[%s695_s1 + $0x18] sm:$0xff]  ;;  %v351_v25 = vld [vmem:[%s694_s0 + $0x190] sm:$0xff]  ;;  %v375_v26 = vld [vmem:[%s694_s0 + $0x240] sm:$0xff] }
   0xa   :  { %177 = vmatpush.msrb.mxu1 %v353_v16  ;;  %48 = vmatpush.msra.mxu0 %v29_v18  ;;  %v27_v27 = vld [vmem:[%s694_s0 + $0x48] sm:$0xff]  ;;  %v327_v28 = vld [vmem:[%s694_s0 + $0xe0] sm:$0xff]  ;;  %v374_v30 = vld [vmem:[%s694_s0 + $0x238] sm:$0xff]  ;;  %v389_v18 = vmov 0  }
   0xb   :  { %213 = vmatpush.msrb.mxu3 %v356_v17  ;;  %114 = vmatpush.msra.mxu2 %v329_v19  ;;  %v350_v29 = vld [vmem:[%s694_s0 + $0x188] sm:$0xff]  ;;  %v26_v31 = vld [vmem:[%s694_s0 + $0x40] sm:$0xff]  ;;  %v326_v32 = vld [vmem:[%s694_s0 + $0xd8] sm:$0xff] }
   0xc   :  { %178 = vmatpush.msrb.mxu1 %v352_v20  ;;  %49 = vmatpush.msra.mxu0 %v28_v22  ;;  %v349_v33 = vld [vmem:[%s694_s0 + $0x180] sm:$0xff]  ;;  %v373_v34 = vld [vmem:[%s694_s0 + $0x230] sm:$0xff]  ;;  %v25_v35 = vld [vmem:[%s694_s0 + $0x38] sm:$0xff] }
   0xd   :  { %214 = vmatpush.msrb.mxu3 %v355_v21  ;;  %115 = vmatpush.msra.mxu2 %v328_v23  ;;  %v325_v36 = vld [vmem:[%s694_s0 + $0xd0] sm:$0xff]  ;;  %v348_v37 = vld [vmem:[%s694_s0 + $0x178] sm:$0xff]  ;;  %v372_v38 = vld [vmem:[%s694_s0 + $0x228] sm:$0xff] }
   0xe   :  { %338 = vmatmul.msk.f32.vlgmr.msra.gmra.mxu3 %vm37_vm0, %v494_v24  ;;  %179 = vmatpush.msrb.mxu1 %v351_v25  ;;  %v24_v39 = vld [vmem:[%s694_s0 + $0x30] sm:$0xff]  ;;  %v324_v40 = vld [vmem:[%s694_s0 + $0xc8] sm:$0xff]  ;;  %v371_v42 = vld [vmem:[%s694_s0 + $0x220] sm:$0xff] }
   0xf   :  { %242 = vmatpush.msra.mxu3 %v375_v26  ;;  %50 = vmatpush.msra.mxu0 %v27_v27  ;;  %v347_v41 = vld [vmem:[%s694_s0 + $0x170] sm:$0xff]  ;;  %v23_v43 = vld [vmem:[%s694_s0 + $0x28] sm:$0xff]  ;;  %v323_v45 = vld [vmem:[%s694_s0 + $0xc0] sm:$0xff] }
  0x10   :  { %116 = vmatpush.msra.mxu2 %v327_v28  ;;  %180 = vmatpush.msrb.mxu1 %v350_v29  ;;  %v558_v44 = vld [vmem:[%s695_s1 + $0x8] sm:$0xff]  ;;  %v370_v46 = vld [vmem:[%s694_s0 + $0x218] sm:$0xff]  ;;  %v22_v48 = vld [vmem:[%s694_s0 + $0x20] sm:$0xff] }
  0x11   :  { %243 = vmatpush.msra.mxu3 %v374_v30  ;;  %51 = vmatpush.msra.mxu0 %v26_v31  ;;  %v346_v47 = vld [vmem:[%s694_s0 + $0x168] sm:$0xff]  ;;  %v322_v49 = vld [vmem:[%s694_s0 + $0xb8] sm:$0xff]  ;;  %v369_v50 = vld [vmem:[%s694_s0 + $0x210] sm:$0xff] }
  0x12   :  { %117 = vmatpush.msra.mxu2 %v326_v32  ;;  %181 = vmatpush.msrb.mxu1 %v349_v33  ;;  %v345_v51 = vld [vmem:[%s694_s0 + $0x160] sm:$0xff]  ;;  %v21_v52 = vld [vmem:[%s694_s0 + $0x18] sm:$0xff]  ;;  %v321_v53 = vld [vmem:[%s694_s0 + $0xb0] sm:$0xff] }
  0x13   :  { %244 = vmatpush.msra.mxu3 %v373_v34  ;;  %52 = vmatpush.msra.mxu0 %v25_v35  ;;  %v368_v54 = vld [vmem:[%s694_s0 + $0x208] sm:$0xff]  ;;  %v344_v55 = vld [vmem:[%s694_s0 + $0x158] sm:$0xff]  ;;  %v20_v56 = vld [vmem:[%s694_s0 + $0x10] sm:$0xff] }
  0x14   :  { %118 = vmatpush.msra.mxu2 %v325_v36  ;;  %182 = vmatpush.msrb.mxu1 %v348_v37  ;;  %v320_v57 = vld [vmem:[%s694_s0 + $0xa8] sm:$0xff]  ;;  %v367_v58 = vld [vmem:[%s694_s0 + $0x200] sm:$0xff]  ;;  %v343_v59 = vld [vmem:[%s694_s0 + $0x150] sm:$0xff] }
  0x15   :  { %245 = vmatpush.msra.mxu3 %v372_v38  ;;  %53 = vmatpush.msra.mxu0 %v24_v39  ;;  %v19_v60 = vld [vmem:[%s694_s0 + $0x8] sm:$0xff]  ;;  %v319_v61 = vld [vmem:[%s694_s0 + $0xa0] sm:$0xff]  ;;  %v366_v62 = vld [vmem:[%s694_s0 + $0x1f8] sm:$0xff] }
  0x16   :  { %119 = vmatpush.msra.mxu2 %v324_v40  ;;  %183 = vmatpush.msrb.mxu1 %v347_v41  ;;  %v342_v63 = vld [vmem:[%s694_s0 + $0x148] sm:$0xff]  ;;  %v18_v0 = vld [vmem:[%s694_s0] sm:$0xff]  ;;  %v318_v1 = vld [vmem:[%s694_s0 + $0x98] sm:$0xff] }
  0x17   :  { %246 = vmatpush.msra.mxu3 %v371_v42  ;;  %54 = vmatpush.msra.mxu0 %v23_v43  ;;  %v365_v2 = vld [vmem:[%s694_s0 + $0x1f0] sm:$0xff]  ;;  %v14_v4 = vld [vmem:[%s695_s1] sm:$0xff]  ;;  %v364_v6 = vld [vmem:[%s694_s0 + $0x1e8] sm:$0xff] }
  0x18   :  { %316 = vmatmul.msk.f32.vlgmr.msra.gmra.mxu1 %vm37_vm0, %v558_v44  ;;  %120 = vmatpush.msra.mxu2 %v323_v45  ;;  %v341_v5 = vld [vmem:[%s694_s0 + $0x140] sm:$0xff]  ;;  %v340_v8 = vld [vmem:[%s694_s0 + $0x138] sm:$0xff]  ;;  %v339_v10 = vld [vmem:[%s694_s0 + $0x130] sm:$0xff] }
  0x19   :  { %247 = vmatpush.msra.mxu3 %v370_v46  ;;  %184 = vmatpush.msrb.mxu1 %v346_v47  ;;  %v363_v9 = vld [vmem:[%s694_s0 + $0x1e0] sm:$0xff]  ;;  %v378_v12 = vld [vmem:[%s694_s0 + $0x258] sm:$0xff]  ;;  %v16_v14 = vld [vmem:[%s695_s1 + $0x10] sm:$0xff] }
  0x1a   :  { %55 = vmatpush.msra.mxu0 %v22_v48  ;;  %121 = vmatpush.msra.mxu2 %v322_v49  ;;  %v362_v13 = vld [vmem:[%s694_s0 + $0x1d8] sm:$0xff]  ;;  %v377_v15 = vld [vmem:[%s694_s0 + $0x250] sm:$0xff]  ;;  %v376_v16 = vld [vmem:[%s694_s0 + $0x248] sm:$0xff] }
  0x1b   :  { %248 = vmatpush.msra.mxu3 %v369_v50  ;;  %185 = vmatpush.msrb.mxu1 %v345_v51  ;;  %v294_v17 = vld [vmem:[%s696_s2] sm:$0xff] }
  0x1c   :  { %56 = vmatpush.msra.mxu0 %v21_v52  ;;  %122 = vmatpush.msra.mxu2 %v321_v53 }
  0x1d   :  { %249 = vmatpush.msra.mxu3 %v368_v54  ;;  %186 = vmatpush.msrb.mxu1 %v344_v55 }
  0x1e   :  { %358 = vmatmul.msk.f32.vlgmr.msrb.gmra.mxu3 %vm37_vm0, %v558_v44  ;;  %57 = vmatpush.msra.mxu0 %v20_v56 }
  0x1f   :  { %123 = vmatpush.msra.mxu2 %v320_v57  ;;  %250 = vmatpush.msra.mxu3 %v367_v58 }
  0x20   :  { %187 = vmatpush.msrb.mxu1 %v343_v59  ;;  %58 = vmatpush.msra.mxu0 %v19_v60 }
  0x21   :  { %317 = vmatmul.msk.f32.gmra.mxu1 %vm37_vm0, %v494_v24  ;;  %124 = vmatpush.msra.mxu2 %v319_v61 }
  0x22   :  { %251 = vmatpush.msra.mxu3 %v366_v62  ;;  %188 = vmatpush.msrb.mxu1 %v342_v63 }
  0x23   :  { %59 = vmatpush.msra.mxu0 %v18_v0  ;;  %125 = vmatpush.msra.mxu2 %v318_v1 }
  0x24   :  { %252 = vmatpush.msra.mxu3 %v365_v2  ;;  %60 = vmatmul.f32.vlgmr.msra.gmra.mxu0 %v14_v4 }
  0x25   :  { %126 = vmatmul.f32.vlgmr.msra.gmra.mxu2 %v14_v4  ;;  %189 = vmatpush.msrb.mxu1 %v341_v5 }
  0x26   :  { %253 = vmatpush.msra.mxu3 %v364_v6  ;;  %146 = vmatpush.msrb.mxu2 %v422_v3  ;;  %v361_v3 = vld [vmem:[%s694_s0 + $0x1d0] sm:$0xff] }
  0x27   :  { %190 = vmatpush.msrb.mxu1 %v340_v8  ;;  %359 = vmatmul.msk.f32.gmra.mxu3 %vm37_vm0, %v494_v24 }
  0x28   :  { %254 = vmatpush.msra.mxu3 %v363_v9  ;;  %147 = vmatpush.msrb.mxu2 %v437_v7  ;;  %v360_v7 = vld [vmem:[%s694_s0 + $0x1c8] sm:$0xff] }
  0x29   :  { %191 = vmatpush.msrb.mxu1 %v339_v10  ;;  %278 = vmatpush.msrb.mxu0 %v378_v12 }
  0x2a   :  { %192 = vmatmul.f32.vlgmr.msrb.gmra.mxu1 %v14_v4  ;;  %255 = vmatpush.msra.mxu3 %v362_v13 }
  0x2b   :  { %384 = vmatpush.msra.mxu1 %v378_v12  ;;  %148 = vmatpush.msrb.mxu2 %v451_v11  ;;  %v295_v11 = vld [vmem:[%s696_s2 + $0x8] sm:$0xff] }
  0x2c   :  { %256 = vmatpush.msra.mxu3 %v361_v3  ;;  %63 = vmatmul.f32.gmra.mxu0 %v16_v14 }
  0x2d   :  { %129 = vmatmul.f32.gmra.mxu2 %v16_v14  ;;  %279 = vmatpush.msrb.mxu0 %v377_v15 }
  0x2e   :  { %257 = vmatpush.msra.mxu3 %v360_v7  ;;  %385 = vmatpush.msra.mxu1 %v377_v15 }
  0x2f   :  { %258 = vmatmul.f32.vlgmr.msra.gmra.mxu3 %v14_v4  ;;  %280 = vmatpush.msrb.mxu0 %v376_v16 }
  0x30   :  { %386 = vmatpush.msra.mxu1 %v376_v16  ;;  %388 = vset.pattern.permute.xlu0 %v389_v18 }
  0x31   :  { %298 = vperm.xlu0 %388, %v294_v17  }
  0x32   :  { %195 = vmatmul.f32.gmra.mxu1 %v16_v14 }
  0x34   :  { %379 = vmatmul.msk.f32.vlgmr.msrb.gmra.mxu0 %vm37_vm0, %v558_v44 }
  0x35   :  { %337 = vmatmul.msk.f32.vlgmr.msrb.gmra.mxu2 %vm37_vm0, %v558_v44 }
  0x37   :  { %261 = vmatmul.f32.gmra.mxu3 %v16_v14 }
  0x39   :  { %303 = vperm.xlu0 %388, %v295_v11  }
  0x3a   :  { %380 = vmatmul.msk.f32.vlgmr.msra.gmra.mxu1 %vm37_vm0, %v494_v24 }
  0x91   :  { %v153_v20 = vpop.f32.mrf.mxu3 }
  0x95   :  { %v84_v19 = vpop.f32.mrf.mxu1 }
  0x9e   :  { %v87_v21 = vpop.f32.mrf.mxu1 }
  0xa1   :  { %v61_v22 = vpop.f32.mrf.mxu0  ;;  %v216_v23 = vpop.f32.mrf.mxu3 }
  0xa2   :  { %v85_v37 = vadd.f32 %v84_v19, %v61_v22 }
  0xa3   :  { %v299_v33 = vpop.permute.xlu0 %298 }
  0xa7   :  { %v193_v25 = vpop.f32.mrf.mxu1 }
  0xa8   :  { %v127_v26 = vpop.f32.mrf.mxu2  ;;  %v217_v38 = vadd.f32 %v216_v23, %v193_v25 }
  0xa9   :  { %v64_v27 = vpop.f32.mrf.mxu0 }
  0xaa   :  { %v219_v28 = vpop.f32.mrf.mxu3  ;;  %v88_v40 = vadd.f32 %v87_v21, %v64_v27 }
  0xab   :  { %v304_v51 = vpop.permute.xlu0 %303 }
  0xaf   :  { %v196_v29 = vpop.f32.mrf.mxu1 }
  0xb0   :  { %v130_v30 = vpop.f32.mrf.mxu2  ;;  %v220_v42 = vadd.f32 %v219_v28, %v196_v29 }
  0xb1   :  { %v282_v32 = vpop.f32.mrf.mxu0  ;;  %v154_v24 = vadd.f32 %v153_v20, %v130_v30 }
  0xb2   :  { %v259_v31 = vpop.f32.mrf.mxu3 }
  0xb3   :  { %v283_v34 = vadd.f32 %v282_v32, %v259_v31  ;;  %v289_v46 = vmax.f32 %v88_v40, %v154_v24 }
  0xb5   :  { %v290_v43 = vmax.f32 %v217_v38, %v283_v34 }
  0xb7   :  { %v285_v36 = vpop.f32.mrf.mxu1 }
  0xb8   :  { %v150_v35 = vpop.f32.mrf.mxu2 }
  0xb9   :  { %v151_v39 = vadd.f32 %v150_v35, %v127_v26 }
  0xba   :  { %v262_v41 = vpop.f32.mrf.mxu3 }
  0xbb   :  { %v288_v44 = vmax.f32 %v85_v37, %v151_v39  ;;  %v286_v45 = vadd.f32 %v285_v36, %v262_v41 }
  0xbd   :  { %v292_v47 = vmax.f32 %v288_v44, %v290_v43  ;;  %v291_v48 = vmax.f32 %v220_v42, %v286_v45 }
  0xbf   :  { %v306_v49 = vadd.f32 %v299_v33, %v292_v47  ;;  %v293_v50 = vmax.f32 %v289_v46, %v291_v48 }
  0xc1   :  { %v308_v52 = vmax.f32 %v306_v49, 0.0  ;;  %v307_v53 = vadd.f32 %v304_v51, %v293_v50 }
  0xc3   :  { %310 = vst [vmem:[%s697_s3] sm:$0xff] %v308_v52  ;;  %v309_v54 = vmax.f32 %v307_v53, 0.0 }
  0xc5   :  { %311 = vst [vmem:[%s697_s3 + $0x8] sm:$0xff] %v309_v54 }

// kernel: net_sl_forward.5
= control target key start
LH: loop header
LB: loop body
LE: loop exit
PB: predicated region body
PF: predicated region fallthrough
CT: control target
= control target key end

     0   :  { %vm356_vm4 = vcmask 162816   ;;  %s823_s1 = inlined_call_operand.vmem [shape: f32[768,128], index: 1, kind: input, shape index: {}]   ;;  %s824_s0 = inlined_call_operand.vmem [shape: f32[8,768], index: 0, kind: input, shape index: {}]   ;;  %s825_s2 = inlined_call_operand.vmem [shape: f32[1,128], index: 2, kind: input, shape index: {}]   ;;  %s826_s3 = inlined_call_operand.vmem [shape: f32[128,128], index: 3, kind: input, shape index: {}]   ;;  %s827_s4 = inlined_call_operand.vmem [shape: f32[1,128], index: 4, kind: input, shape index: {}]   ;;  %s828_s5 = inlined_call_operand.vmem [shape: f32[128,128], index: 5, kind: input, shape index: {}]   ;;  %s829_s6 = inlined_call_operand.vmem [shape: f32[1,128], index: 6, kind: input, shape index: {}]   ;;  %s830_s7 = inlined_call_operand.vmem [shape: f32[8,20], index: 7, kind: output, shape index: {}]  }
   0x1   :  { %v47_v0 = vld [vmem:[%s823_s1 + $0x78] sm:$0xff]  ;;  %v46_v1 = vld [vmem:[%s823_s1 + $0x70] sm:$0xff]  ;;  %v45_v4 = vld [vmem:[%s823_s1 + $0x68] sm:$0xff] }
   0x2   :  { %v63_v2 = vld [vmem:[%s823_s1 + $0xf8] sm:$0xff]  ;;  %132 = vmatpush.msra.mxu0 %v47_v0  ;;  %v62_v3 = vld [vmem:[%s823_s1 + $0xf0] sm:$0xff]  ;;  %v61_v5 = vld [vmem:[%s823_s1 + $0xe8] sm:$0xff] }
   0x3   :  { %152 = vmatpush.msra.mxu1 %v63_v2  ;;  %v44_v6 = vld [vmem:[%s823_s1 + $0x60] sm:$0xff]  ;;  %v43_v8 = vld [vmem:[%s823_s1 + $0x58] sm:$0xff]  ;;  %v42_v10 = vld [vmem:[%s823_s1 + $0x50] sm:$0xff] }
   0x4   :  { %133 = vmatpush.msra.mxu0 %v46_v1  ;;  %v60_v7 = vld [vmem:[%s823_s1 + $0xe0] sm:$0xff]  ;;  %v59_v9 = vld [vmem:[%s823_s1 + $0xd8] sm:$0xff]  ;;  %v58_v12 = vld [vmem:[%s823_s1 + $0xd0] sm:$0xff] }
   0x5   :  { %153 = vmatpush.msra.mxu1 %v62_v3  ;;  %v79_v11 = vld [vmem:[%s823_s1 + $0x178] sm:$0xff]  ;;  %v78_v13 = vld [vmem:[%s823_s1 + $0x170] sm:$0xff]  ;;  %v77_v15 = vld [vmem:[%s823_s1 + $0x168] sm:$0xff] }
   0x6   :  { %134 = vmatpush.msra.mxu0 %v45_v4  ;;  %172 = vmatpush.msra.mxu2 %v79_v11  ;;  %v95_v14 = vld [vmem:[%s823_s1 + $0x1f8] sm:$0xff]  ;;  %v94_v16 = vld [vmem:[%s823_s1 + $0x1f0] sm:$0xff]  ;;  %v41_v17 = vld [vmem:[%s823_s1 + $0x48] sm:$0xff] }
   0x7   :  { %154 = vmatpush.msra.mxu1 %v61_v5  ;;  %v57_v18 = vld [vmem:[%s823_s1 + $0xc8] sm:$0xff]  ;;  %192 = vmatpush.msra.mxu3 %v95_v14  ;;  %v76_v19 = vld [vmem:[%s823_s1 + $0x160] sm:$0xff]  ;;  %v75_v23 = vld [vmem:[%s823_s1 + $0x158] sm:$0xff] }
   0x8   :  { %135 = vmatpush.msra.mxu0 %v44_v6  ;;  %173 = vmatpush.msra.mxu2 %v78_v13  ;;  %v93_v20 = vld [vmem:[%s823_s1 + $0x1e8] sm:$0xff]  ;;  %v40_v21 = vld [vmem:[%s823_s1 + $0x40] sm:$0xff]  ;;  %v39_v25 = vld [vmem:[%s823_s1 + $0x38] sm:$0xff] }
   0x9   :  { %155 = vmatpush.msra.mxu1 %v60_v7  ;;  %v56_v22 = vld [vmem:[%s823_s1 + $0xc0] sm:$0xff]  ;;  %193 = vmatpush.msra.mxu3 %v94_v16  ;;  %v55_v26 = vld [vmem:[%s823_s1 + $0xb8] sm:$0xff]  ;;  %v74_v27 = vld [vmem:[%s823_s1 + $0x150] sm:$0xff] }
   0xa   :  { %136 = vmatpush.msra.mxu0 %v43_v8  ;;  %174 = vmatpush.msra.mxu2 %v77_v15  ;;  %v92_v24 = vld [vmem:[%s823_s1 + $0x1e0] sm:$0xff]  ;;  %v91_v28 = vld [vmem:[%s823_s1 + $0x1d8] sm:$0xff]  ;;  %v38_v29 = vld [vmem:[%s823_s1 + $0x30] sm:$0xff] }
   0xb   :  { %156 = vmatpush.msra.mxu1 %v59_v9  ;;  %194 = vmatpush.msra.mxu3 %v93_v20  ;;  %v54_v30 = vld [vmem:[%s823_s1 + $0xb0] sm:$0xff]  ;;  %v73_v31 = vld [vmem:[%s823_s1 + $0x148] sm:$0xff]  ;;  %v72_v35 = vld [vmem:[%s823_s1 + $0x140] sm:$0xff] }
   0xc   :  { %137 = vmatpush.msra.mxu0 %v42_v10  ;;  %175 = vmatpush.msra.mxu2 %v76_v19  ;;  %v90_v32 = vld [vmem:[%s823_s1 + $0x1d0] sm:$0xff]  ;;  %v37_v33 = vld [vmem:[%s823_s1 + $0x28] sm:$0xff]  ;;  %v36_v37 = vld [vmem:[%s823_s1 + $0x20] sm:$0xff] }
   0xd   :  { %157 = vmatpush.msra.mxu1 %v58_v12  ;;  %195 = vmatpush.msra.mxu3 %v92_v24  ;;  %v53_v34 = vld [vmem:[%s823_s1 + $0xa8] sm:$0xff]  ;;  %v52_v38 = vld [vmem:[%s823_s1 + $0xa0] sm:$0xff]  ;;  %v71_v39 = vld [vmem:[%s823_s1 + $0x138] sm:$0xff] }
   0xe   :  { %138 = vmatpush.msra.mxu0 %v41_v17  ;;  %176 = vmatpush.msra.mxu2 %v75_v23  ;;  %v89_v36 = vld [vmem:[%s823_s1 + $0x1c8] sm:$0xff]  ;;  %v88_v40 = vld [vmem:[%s823_s1 + $0x1c0] sm:$0xff]  ;;  %v35_v41 = vld [vmem:[%s823_s1 + $0x18] sm:$0xff] }
   0xf   :  { %158 = vmatpush.msra.mxu1 %v57_v18  ;;  %196 = vmatpush.msra.mxu3 %v91_v28  ;;  %v51_v42 = vld [vmem:[%s823_s1 + $0x98] sm:$0xff]  ;;  %v70_v43 = vld [vmem:[%s823_s1 + $0x130] sm:$0xff]  ;;  %v69_v47 = vld [vmem:[%s823_s1 + $0x128] sm:$0xff] }
  0x10   :  { %139 = vmatpush.msra.mxu0 %v40_v21  ;;  %177 = vmatpush.msra.mxu2 %v74_v27  ;;  %v87_v44 = vld [vmem:[%s823_s1 + $0x1b8] sm:$0xff]  ;;  %v34_v45 = vld [vmem:[%s823_s1 + $0x10] sm:$0xff]  ;;  %v33_v49 = vld [vmem:[%s823_s1 + $0x8] sm:$0xff] }
  0x11   :  { %159 = vmatpush.msra.mxu1 %v56_v22  ;;  %197 = vmatpush.msra.mxu3 %v90_v32  ;;  %v50_v46 = vld [vmem:[%s823_s1 + $0x90] sm:$0xff]  ;;  %v49_v50 = vld [vmem:[%s823_s1 + $0x88] sm:$0xff]  ;;  %v68_v51 = vld [vmem:[%s823_s1 + $0x120] sm:$0xff] }
  0x12   :  { %140 = vmatpush.msra.mxu0 %v39_v25  ;;  %178 = vmatpush.msra.mxu2 %v73_v31  ;;  %v86_v48 = vld [vmem:[%s823_s1 + $0x1b0] sm:$0xff]  ;;  %v85_v52 = vld [vmem:[%s823_s1 + $0x1a8] sm:$0xff]  ;;  %v32_v53 = vld [vmem:[%s823_s1] sm:$0xff] }
  0x13   :  { %160 = vmatpush.msra.mxu1 %v55_v26  ;;  %198 = vmatpush.msra.mxu3 %v89_v36  ;;  %v48_v54 = vld [vmem:[%s823_s1 + $0x80] sm:$0xff]  ;;  %v111_v55 = vld [vmem:[%s823_s1 + $0x278] sm:$0xff]  ;;  %v110_v59 = vld [vmem:[%s823_s1 + $0x270] sm:$0xff] }
  0x14   :  { %141 = vmatpush.msra.mxu0 %v38_v29  ;;  %179 = vmatpush.msra.mxu2 %v72_v35  ;;  %v127_v56 = vld [vmem:[%s823_s1 + $0x2f8] sm:$0xff]  ;;  %v84_v58 = vld [vmem:[%s823_s1 + $0x1a0] sm:$0xff]  ;;  %v126_v60 = vld [vmem:[%s823_s1 + $0x2f0] sm:$0xff] }
  0x15   :  { %161 = vmatpush.msra.mxu1 %v54_v30  ;;  %199 = vmatpush.msra.mxu3 %v88_v40  ;;  %v67_v57 = vld [vmem:[%s823_s1 + $0x118] sm:$0xff]  ;;  %v66_v61 = vld [vmem:[%s823_s1 + $0x110] sm:$0xff]  ;;  %v109_v63 = vld [vmem:[%s823_s1 + $0x268] sm:$0xff] }
  0x16   :  { %142 = vmatpush.msra.mxu0 %v37_v33  ;;  %180 = vmatpush.msra.mxu2 %v71_v39  ;;  %v83_v62 = vld [vmem:[%s823_s1 + $0x198] sm:$0xff]  ;;  %v125_v0 = vld [vmem:[%s823_s1 + $0x2e8] sm:$0xff]  ;;  %v82_v2 = vld [vmem:[%s823_s1 + $0x190] sm:$0xff] }
  0x17   :  { %162 = vmatpush.msra.mxu1 %v53_v34  ;;  %200 = vmatpush.msra.mxu3 %v87_v44  ;;  %v65_v1 = vld [vmem:[%s823_s1 + $0x108] sm:$0xff]  ;;  %v108_v3 = vld [vmem:[%s823_s1 + $0x260] sm:$0xff]  ;;  %v107_v7 = vld [vmem:[%s823_s1 + $0x258] sm:$0xff] }
  0x18   :  { %143 = vmatpush.msra.mxu0 %v36_v37  ;;  %181 = vmatpush.msra.mxu2 %v70_v43  ;;  %v124_v4 = vld [vmem:[%s823_s1 + $0x2e0] sm:$0xff]  ;;  %v81_v6 = vld [vmem:[%s823_s1 + $0x188] sm:$0xff]  ;;  %v123_v8 = vld [vmem:[%s823_s1 + $0x2d8] sm:$0xff] }
  0x19   :  { %163 = vmatpush.msra.mxu1 %v52_v38  ;;  %201 = vmatpush.msra.mxu3 %v86_v48  ;;  %v64_v5 = vld [vmem:[%s823_s1 + $0x100] sm:$0xff]  ;;  %v28_v9 = vld [vmem:[%s824_s0 + $0x10] sm:$0xff]  ;;  %v29_v14 = vld [vmem:[%s824_s0 + $0x18] sm:$0xff] }
  0x1a   :  { %144 = vmatpush.msra.mxu0 %v35_v41  ;;  %182 = vmatpush.msra.mxu2 %v69_v47  ;;  %v80_v10 = vld [vmem:[%s823_s1 + $0x180] sm:$0xff]  ;;  %v106_v11 = vld [vmem:[%s823_s1 + $0x250] sm:$0xff]  ;;  %v105_v15 = vld [vmem:[%s823_s1 + $0x248] sm:$0xff] }
  0x1b   :  { %164 = vmatpush.msra.mxu1 %v51_v42  ;;  %202 = vmatpush.msra.mxu3 %v85_v52  ;;  %v122_v12 = vld [vmem:[%s823_s1 + $0x2d0] sm:$0xff]  ;;  %v26_v13 = vld [vmem:[%s824_s0] sm:$0xff]  ;;  %v121_v16 = vld [vmem:[%s823_s1 + $0x2c8] sm:$0xff] }
  0x1c   :  { %145 = vmatpush.msra.mxu0 %v34_v45  ;;  %183 = vmatpush.msra.mxu2 %v68_v51  ;;  %v27_v17 = vld [vmem:[%s824_s0 + $0x8] sm:$0xff]  ;;  %v268_v18 = vld [vmem:[%s826_s3 + $0x78] sm:$0xff]  ;;  %v104_v19 = vld [vmem:[%s823_s1 + $0x240] sm:$0xff] }
  0x1d   :  { %165 = vmatpush.msra.mxu1 %v50_v46  ;;  %203 = vmatpush.msra.mxu3 %v84_v58  ;;  %v120_v20 = vld [vmem:[%s823_s1 + $0x2c0] sm:$0xff]  ;;  %v267_v21 = vld [vmem:[%s826_s3 + $0x70] sm:$0xff]  ;;  %v103_v22 = vld [vmem:[%s823_s1 + $0x238] sm:$0xff] }
  0x1e   :  { %146 = vmatpush.msra.mxu0 %v33_v49  ;;  %184 = vmatpush.msra.mxu2 %v67_v57  ;;  %v119_v23 = vld [vmem:[%s823_s1 + $0x2b8] sm:$0xff]  ;;  %v266_v24 = vld [vmem:[%s826_s3 + $0x68] sm:$0xff]  ;;  %v102_v25 = vld [vmem:[%s823_s1 + $0x230] sm:$0xff] }
  0x1f   :  { %166 = vmatpush.msra.mxu1 %v49_v50  ;;  %204 = vmatpush.msra.mxu3 %v83_v62  ;;  %v118_v26 = vld [vmem:[%s823_s1 + $0x2b0] sm:$0xff]  ;;  %v265_v27 = vld [vmem:[%s826_s3 + $0x60] sm:$0xff]  ;;  %v101_v28 = vld [vmem:[%s823_s1 + $0x228] sm:$0xff] }
  0x20   :  { %147 = vmatpush.msra.mxu0 %v32_v53  ;;  %185 = vmatpush.msra.mxu2 %v66_v61  ;;  %v117_v29 = vld [vmem:[%s823_s1 + $0x2a8] sm:$0xff]  ;;  %v264_v30 = vld [vmem:[%s826_s3 + $0x58] sm:$0xff]  ;;  %v100_v31 = vld [vmem:[%s823_s1 + $0x220] sm:$0xff] }
  0x21   :  { %167 = vmatpush.msra.mxu1 %v48_v54  ;;  %205 = vmatpush.msra.mxu3 %v82_v2  ;;  %v116_v32 = vld [vmem:[%s823_s1 + $0x2a0] sm:$0xff]  ;;  %v263_v33 = vld [vmem:[%s826_s3 + $0x50] sm:$0xff]  ;;  %v99_v34 = vld [vmem:[%s823_s1 + $0x218] sm:$0xff] }
  0x22   :  { %212 = vmatpush.msrb.mxu0 %v111_v55  ;;  %186 = vmatpush.msra.mxu2 %v65_v1  ;;  %v115_v35 = vld [vmem:[%s823_s1 + $0x298] sm:$0xff]  ;;  %v262_v36 = vld [vmem:[%s826_s3 + $0x48] sm:$0xff]  ;;  %v98_v37 = vld [vmem:[%s823_s1 + $0x210] sm:$0xff] }
  0x23   :  { %232 = vmatpush.msrb.mxu1 %v127_v56  ;;  %206 = vmatpush.msra.mxu3 %v81_v6  ;;  %v114_v38 = vld [vmem:[%s823_s1 + $0x290] sm:$0xff]  ;;  %v261_v39 = vld [vmem:[%s826_s3 + $0x40] sm:$0xff]  ;;  %v97_v40 = vld [vmem:[%s823_s1 + $0x208] sm:$0xff] }
  0x24   :  { %213 = vmatpush.msrb.mxu0 %v110_v59  ;;  %187 = vmatpush.msra.mxu2 %v64_v5  ;;  %v113_v41 = vld [vmem:[%s823_s1 + $0x288] sm:$0xff]  ;;  %v96_v42 = vld [vmem:[%s823_s1 + $0x200] sm:$0xff]  ;;  %v260_v46 = vld [vmem:[%s826_s3 + $0x38] sm:$0xff] }
  0x25   :  { %233 = vmatpush.msrb.mxu1 %v126_v60  ;;  %188 = vmatmul.f32.vlgmr.msra.gmra.mxu2 %v28_v9  ;;  %v112_v43 = vld [vmem:[%s823_s1 + $0x280] sm:$0xff]  ;;  %v31_v45 = vld [vmem:[%s824_s0 + $0x28] sm:$0xff]  ;;  %v259_v47 = vld [vmem:[%s826_s3 + $0x30] sm:$0xff] }
  0x26   :  { %214 = vmatpush.msrb.mxu0 %v109_v63  ;;  %207 = vmatpush.msra.mxu3 %v80_v10  ;;  %v30_v44 = vld [vmem:[%s824_s0 + $0x20] sm:$0xff]  ;;  %v258_v48 = vld [vmem:[%s826_s3 + $0x28] sm:$0xff]  ;;  %v256_v50 = vld [vmem:[%s826_s3 + $0x18] sm:$0xff] }
  0x27   :  { %234 = vmatpush.msrb.mxu1 %v125_v0  ;;  %148 = vmatmul.f32.vlgmr.msra.gmra.mxu0 %v26_v13  ;;  %v257_v49 = vld [vmem:[%s826_s3 + $0x20] sm:$0xff]  ;;  %v255_v51 = vld [vmem:[%s826_s3 + $0x10] sm:$0xff]  ;;  %v254_v52 = vld [vmem:[%s826_s3 + $0x8] sm:$0xff] }
  0x28   :  { %215 = vmatpush.msrb.mxu0 %v108_v3  ;;  %208 = vmatmul.f32.vlgmr.msra.gmra.mxu3 %v29_v14  ;;  %v253_v53 = vld [vmem:[%s826_s3] sm:$0xff]  ;;  %v309_v54 = vld [vmem:[%s828_s5 + $0x78] sm:$0xff]  ;;  %v308_v55 = vld [vmem:[%s828_s5 + $0x70] sm:$0xff] }
  0x29   :  { %235 = vmatpush.msrb.mxu1 %v124_v4  ;;  %273 = vmatpush.msrb.mxu2 %v268_v18  ;;  %v307_v56 = vld [vmem:[%s828_s5 + $0x68] sm:$0xff]  ;;  %v306_v57 = vld [vmem:[%s828_s5 + $0x60] sm:$0xff]  ;;  %v305_v59 = vld [vmem:[%s828_s5 + $0x58] sm:$0xff] }
  0x2a   :  { %216 = vmatpush.msrb.mxu0 %v107_v7  ;;  %168 = vmatmul.f32.vlgmr.msra.gmra.mxu1 %v27_v17  ;;  %v362_v58 = vld [vmem:[%s825_s2] ss:$0 sm:$0xff]  ;;  %v304_v61 = vld [vmem:[%s828_s5 + $0x50] sm:$0xff]  ;;  %v303_v63 = vld [vmem:[%s828_s5 + $0x48] sm:$0xff] }
  0x2b   :  { %236 = vmatpush.msrb.mxu1 %v123_v8  ;;  %274 = vmatpush.msrb.mxu2 %v267_v21  ;;  %v302_v1 = vld [vmem:[%s828_s5 + $0x40] sm:$0xff]  ;;  %v301_v3 = vld [vmem:[%s828_s5 + $0x38] sm:$0xff]  ;;  %v300_v5 = vld [vmem:[%s828_s5 + $0x30] sm:$0xff] }
  0x2c   :  { %217 = vmatpush.msrb.mxu0 %v106_v11  ;;  %314 = vmatpush.msrb.mxu3 %v309_v54  ;;  %v299_v7 = vld [vmem:[%s828_s5 + $0x28] sm:$0xff]  ;;  %v298_v9 = vld [vmem:[%s828_s5 + $0x20] sm:$0xff]  ;;  %v297_v11 = vld [vmem:[%s828_s5 + $0x18] sm:$0xff] }
  0x2d   :  { %237 = vmatpush.msrb.mxu1 %v122_v12  ;;  %275 = vmatpush.msrb.mxu2 %v266_v24  ;;  %v296_v17 = vld [vmem:[%s828_s5 + $0x10] sm:$0xff]  ;;  %v295_v18 = vld [vmem:[%s828_s5 + $0x8] sm:$0xff]  ;;  %v364_v24 = vld [vmem:[%s829_s6] ss:$0 sm:$0xff] }
  0x2e   :  { %218 = vmatpush.msrb.mxu0 %v105_v15  ;;  %315 = vmatpush.msrb.mxu3 %v308_v55 }
  0x2f   :  { %238 = vmatpush.msrb.mxu1 %v121_v16  ;;  %276 = vmatpush.msrb.mxu2 %v265_v27 }
  0x30   :  { %219 = vmatpush.msrb.mxu0 %v104_v19  ;;  %316 = vmatpush.msrb.mxu3 %v307_v56  ;;  %v294_v19 = vld [vmem:[%s828_s5] sm:$0xff] }
  0x31   :  { %239 = vmatpush.msrb.mxu1 %v120_v20  ;;  %277 = vmatpush.msrb.mxu2 %v264_v30  ;;  %v363_v20 = vld [vmem:[%s827_s4] ss:$0 sm:$0xff] }
  0x32   :  { %220 = vmatpush.msrb.mxu0 %v103_v22  ;;  %317 = vmatpush.msrb.mxu3 %v306_v57 }
  0x33   :  { %240 = vmatpush.msrb.mxu1 %v119_v23  ;;  %278 = vmatpush.msrb.mxu2 %v263_v33 }
  0x34   :  { %221 = vmatpush.msrb.mxu0 %v102_v25  ;;  %318 = vmatpush.msrb.mxu3 %v305_v59 }
  0x35   :  { %241 = vmatpush.msrb.mxu1 %v118_v26  ;;  %279 = vmatpush.msrb.mxu2 %v262_v36 }
  0x36   :  { %222 = vmatpush.msrb.mxu0 %v101_v28  ;;  %319 = vmatpush.msrb.mxu3 %v304_v61 }
  0x37   :  { %242 = vmatpush.msrb.mxu1 %v117_v29  ;;  %280 = vmatpush.msrb.mxu2 %v261_v39 }
  0x38   :  { %223 = vmatpush.msrb.mxu0 %v100_v31  ;;  %320 = vmatpush.msrb.mxu3 %v303_v63 }
  0x39   :  { %243 = vmatpush.msrb.mxu1 %v116_v32  ;;  %281 = vmatpush.msrb.mxu2 %v260_v46 }
  0x3a   :  { %224 = vmatpush.msrb.mxu0 %v99_v34  ;;  %321 = vmatpush.msrb.mxu3 %v302_v1 }
  0x3b   :  { %244 = vmatpush.msrb.mxu1 %v115_v35  ;;  %282 = vmatpush.msrb.mxu2 %v259_v47 }
  0x3c   :  { %225 = vmatpush.msrb.mxu0 %v98_v37  ;;  %322 = vmatpush.msrb.mxu3 %v301_v3 }
  0x3d   :  { %245 = vmatpush.msrb.mxu1 %v114_v38  ;;  %283 = vmatpush.msrb.mxu2 %v258_v48 }
  0x3e   :  { %226 = vmatpush.msrb.mxu0 %v97_v40  ;;  %323 = vmatpush.msrb.mxu3 %v300_v5 }
  0x3f   :  { %246 = vmatpush.msrb.mxu1 %v113_v41  ;;  %284 = vmatpush.msrb.mxu2 %v257_v49 }
  0x40   :  { %227 = vmatpush.msrb.mxu0 %v96_v42  ;;  %324 = vmatpush.msrb.mxu3 %v299_v7 }
  0x41   :  { %247 = vmatpush.msrb.mxu1 %v112_v43  ;;  %228 = vmatmul.f32.vlgmr.msrb.gmra.mxu0 %v30_v44 }
  0x42   :  { %248 = vmatmul.f32.vlgmr.msrb.gmra.mxu1 %v31_v45  ;;  %285 = vmatpush.msrb.mxu2 %v256_v50 }
  0x43   :  { %325 = vmatpush.msrb.mxu3 %v298_v9 }
  0x44   :  { %286 = vmatpush.msrb.mxu2 %v255_v51 }
  0x45   :  { %326 = vmatpush.msrb.mxu3 %v297_v11 }
  0x46   :  { %287 = vmatpush.msrb.mxu2 %v254_v52 }
  0x47   :  { %327 = vmatpush.msrb.mxu3 %v296_v17 }
  0x48   :  { %288 = vmatpush.msrb.mxu2 %v253_v53 }
  0x49   :  { %328 = vmatpush.msrb.mxu3 %v295_v18 }
  0x4b   :  { %329 = vmatpush.msrb.mxu3 %v294_v19 }
  0xa4   :  { %v149_v60 = vpop.f32.mrf.mxu0 }
  0xa5   :  { %v150_v62 = vadd.f32 %v362_v58, %v149_v60 }
  0xa7   :  { %v169_v0 = vpop.f32.mrf.mxu1 }
  0xa8   :  { %v170_v2 = vadd.f32 %v169_v0, %v150_v62  ;;  %v189_v4 = vpop.f32.mrf.mxu2 }
  0xaa   :  { %v190_v6 = vadd.f32 %v189_v4, %v170_v2 }
  0xab   :  { %v209_v8 = vpop.f32.mrf.mxu3 }
  0xac   :  { %v210_v10 = vadd.f32 %v209_v8, %v190_v6 }
  0xbe   :  { %v229_v12 = vpop.f32.mrf.mxu0 }
  0xbf   :  { %v249_v13 = vpop.f32.mrf.mxu1  ;;  %v230_v14 = vadd.f32 %v229_v12, %v210_v10 }
  0xc1   :  { %v250_v15 = vadd.f32 %v249_v13, %v230_v14 }
  0xc3   :  { %v252_v16 = vmax.f32 %v250_v15, 0.0 }
  0xc5   :  { %289 = vmatmul.f32.vlgmr.msrb.gmra.mxu2 %v252_v16 }
 0x148   :  { %v290_v21 = vpop.f32.mrf.mxu2 }
 0x149   :  { %v291_v22 = vadd.f32 %v363_v20, %v290_v21 }
 0x14b   :  { %v293_v23 = vmax.f32 %v291_v22, 0.0 }
 0x14d   :  { %330 = vmatmul.f32.vlgmr.msrb.gmra.mxu3 %v293_v23 }
 0x1d0   :  { %v331_v25 = vpop.f32.mrf.mxu3 }
 0x1d1   :  { %v332_v26 = vadd.f32 %v364_v24, %v331_v25 }
 0x1d3   :  { %334 = vmax.xlane.f32.xlu0 %v332_v26 }
 0x246   :  { %v335_v27 = vpop.xlane.xlu0 %334 }
 0x247   :  { %v336_v28 = vsub.f32 %v332_v26, %v335_v27 }
 0x249   :  { %v337_v29 = vmul.f32 1.442695, %v336_v28 }
 0x24b   :  { %365 = vpow2.f32 %v337_v29 }
 0x251   :  { %v366_v30 = vpop.eup %365 }
 0x252   :  { %339 = vadd.xlane.f32.xlu0 %v366_v30 }
 0x2c5   :  { %v340_v31 = vpop.xlane.xlu0 %339 }
 0x2c6   :  { %367 = vrcp.f32 %v340_v31  ;;  %v352_v35 = vand.u32 2147483648, %v340_v31  ;;  %v350_v37 = vand.u32 2147483647, %v340_v31  ;;  %vm346_vm1 = vweird.f32 %v340_v31 }
 0x2c8   :  { %v353_v39 = vor.u32 1.1754944e-38, %v352_v35  ;;  %vm351_vm3 = vcmp.eq.f32.partialorder %v350_v37, 8.507059e+37 }
 0x2cc   :  { %v368_v32 = vpop.eup %367 }
 0x2cd   :  { %v342_v33 = vmul.f32 %v368_v32, %v340_v31  ;;  %vm347_vm0 = vweird.f32 %v368_v32 }
 0x2ce   :  { %vm348_vm2 = vmor %vm346_vm1, %vm347_vm0 }
 0x2cf   :  { %v343_v34 = vsub.f32 1.0, %v342_v33 }
 0x2d1   :  { %v344_v36 = vmul.f32 %v368_v32, %v343_v34 }
 0x2d3   :  { %v345_v38 = vadd.f32 %v368_v32, %v344_v36 }
 0x2d5   :  { %v349_v40 = vsel %vm348_vm2, %v368_v32, %v345_v38 }
 0x2d6   :  { %v354_v41 = vsel %vm351_vm3, %v353_v39, %v349_v40 }
 0x2d7   :  { %v355_v42 = vmul.f32 %v366_v30, %v354_v41 }
 0x2d9   :  { %357 = vst.msk [vmem:[%s830_s7] sm:$0xff] %vm356_vm4, %v355_v42 }

</bundles_post_ra>
